<compile_context>
chip_gen: v7x
topology: tpu7x:2x2x1
jax: 0.10.0
libtpu: 0.0.40
codegen_flags: <defaults>
</compile_context>

<pallas_src>
import jax
import jax.numpy as jnp
from jax.experimental import pallas as pl
from jax.experimental.pallas import tpu as pltpu

EPS = 1e-5  # PyTorch BatchNorm2d default eps

CONV_K, CONV_S, CONV_P = 3, 4, 2
POOL_K, POOL_S, POOL_P = 3, 2, 1


# ---------------- fused Pallas kernel (whole forward pass) ----------------

def net1_fused_kernel(p_ref, w_ref, scale_ref, shift_ref, bias_ref,
                      fcw_ref, sel_ref, fcb_ref, o_ref):
    """Whole Net1 forward on one VMEM-resident tile.

    p_ref    : [9, R, K]  im2col patches, one slice per 3x3 pooling tap (R = B*5*5, K = 27)
    w_ref    : [K, 10]    conv weight as GEMM rhs, rows in (kh, kw, c_in) order
    scale_ref: [1, 10]    folded BN scale  (gamma / sqrt(var + eps))
    shift_ref: [1, 10]    folded BN shift  ((conv_b - mean) * scale + beta)
    bias_ref : [9, R, 1]  0 where the pooling tap is in-bounds, -1e30 where it is pool padding
    fcw_ref  : [R, 10]    fc weight permuted to pooled (spatial, channel) order, tiled over batch
    sel_ref  : [B, R]     per-batch row selector (1 on the 25 rows belonging to that batch)
    fcb_ref  : [1, 1]     fc bias
    o_ref    : [B, 1]     sigmoid(fc(...))
    """
    w = w_ref[...]
    scale = scale_ref[...]
    shift = shift_ref[...]

    # conv-as-GEMM per pooling tap (BN + conv bias folded), running max across the 3x3 window.
    m = None
    for t in range(p_ref.shape[0]):
        yt = jnp.dot(p_ref[t], w, preferred_element_type=jnp.float32)
        yt = yt * scale + shift + bias_ref[t]
        m = yt if m is None else jnp.maximum(m, yt)

    pooled = jnp.maximum(m, 0.0)                                   # relu(maxpool(bn(conv))), [R, 10]

    # FC as a VPU multiply + per-batch reduction (weight already in pooled layout), then sigmoid.
    prod = pooled * fcw_ref[...]                                   # [R, 10]
    per_batch = jnp.dot(sel_ref[...], prod,                        # [B, 10]
                        preferred_element_type=jnp.float32)
    logit = jnp.sum(per_batch, axis=1, keepdims=True) + fcb_ref[...]   # [B, 1]
    o_ref[...] = jax.nn.sigmoid(logit)


# ---------------- forward pass ----------------

def net1_forward(x, params):
    B, C_in, H, W = x.shape
    conv_w = params["conv_w"]                               # [10, 3, 3, 3]
    C_out = conv_w.shape[0]

    Ho = (H + 2 * CONV_P - CONV_K) // CONV_S + 1            # 9 for H=32
    Wo = (W + 2 * CONV_P - CONV_K) // CONV_S + 1
    Hp = (Ho + 2 * POOL_P - POOL_K) // POOL_S + 1           # 5
    Wp = (Wo + 2 * POOL_P - POOL_K) // POOL_S + 1
    K = C_in * CONV_K * CONV_K                              # 27
    R = B * Hp * Wp                                         # pooled rows

    # ---------- im2col, channels-last (cheap NHWC glue, no big transpose) ----------
    xp = jnp.pad(x, ((0, 0), (0, 0), (CONV_P, CONV_P), (CONV_P, CONV_P)))
    xhwc = jnp.transpose(xp, (0, 2, 3, 1))                  # [B, 36, 36, 3]
    lim_h = (Ho - 1) * CONV_S + 1
    lim_w = (Wo - 1) * CONV_S + 1
    taps = []
    for kh in range(CONV_K):
        for kw in range(CONV_K):
            taps.append(xhwc[:, kh:kh + lim_h:CONV_S, kw:kw + lim_w:CONV_S, :])  # [B,Ho,Wo,3]
    patches = jnp.stack(taps, axis=3).reshape(B, Ho, Wo, K)  # K order = (kh, kw, c_in)

    # ---------- expand to the 3x3 pooling taps (pool padding=1 handled via -1e30 mask) ----------
    patches_p = jnp.pad(patches, ((0, 0), (POOL_P, POOL_P), (POOL_P, POOL_P), (0, 0)))
    span_h = (Hp - 1) * POOL_S + 1
    span_w = (Wp - 1) * POOL_S + 1
    rh = jnp.arange(Hp) * POOL_S - POOL_P
    rw = jnp.arange(Wp) * POOL_S - POOL_P
    wins, bias = [], []
    for dh in range(POOL_K):
        for dw in range(POOL_K):
            wins.append(patches_p[:, dh:dh + span_h:POOL_S, dw:dw + span_w:POOL_S, :])  # [B,Hp,Wp,K]
            valid = ((rh + dh >= 0) & (rh + dh < Ho))[:, None] & \
                    ((rw + dw >= 0) & (rw + dw < Wo))[None, :]
            bias.append(jnp.where(valid, 0.0, -1e30).astype(jnp.float32))               # [Hp,Wp]
    pool_patches = jnp.stack(wins, axis=0).reshape(POOL_K * POOL_K, R, K)
    pool_bias = jnp.tile(
        jnp.stack(bias, axis=0).reshape(POOL_K * POOL_K, Hp * Wp, 1), (1, B, 1))         # [9, R, 1]

    # ---------- fold conv bias + eval BatchNorm into per-channel scale / shift ----------
    # TODO(synk): training-mode BatchNorm (batch statistics) not implemented; eval running stats used.
    scale = params["bn_gamma"] / jnp.sqrt(params["bn_var"] + EPS)
    shift = (params["conv_b"] - params["bn_mean"]) * scale + params["bn_beta"]
    scale2 = scale.reshape(1, C_out)
    shift2 = shift.reshape(1, C_out)

    # conv weight as GEMM rhs with rows in the same (kh, kw, c_in) order as the patches
    w_gemm = jnp.transpose(conv_w, (2, 3, 1, 0)).reshape(K, C_out)

    # ---------- FC weight permuted to the pooled (spatial, channel) layout ----------
    # PyTorch flattens NCHW: flat index = c*Hp*Wp + s; kernel rows are (b, s) with channels last.
    # TODO(synk): Dropout(0.5) is eval-mode identity here; training-mode random mask not applied.
    fcw_sc = jnp.transpose(params["fc_w"].reshape(C_out, Hp * Wp))       # [25, 10]
    fcw_tiled = jnp.tile(fcw_sc, (B, 1))                                  # [R, 10]
    sel = jnp.repeat(jnp.eye(B, dtype=jnp.float32), Hp * Wp, axis=1)      # [B, R]
    fcb = params["fc_b"].reshape(1, 1)

    # ---------- single fused pallas_call (everything fits comfortably in VMEM) ----------
    out = pl.pallas_call(
        net1_fused_kernel,
        out_shape=jax.ShapeDtypeStruct((B, 1), jnp.float32),
        grid=(1,),
        in_specs=[
            pl.BlockSpec((POOL_K * POOL_K, R, K), lambda i: (0, 0, 0)),
            pl.BlockSpec((K, C_out), lambda i: (0, 0)),
            pl.BlockSpec((1, C_out), lambda i: (0, 0)),
            pl.BlockSpec((1, C_out), lambda i: (0, 0)),
            pl.BlockSpec((POOL_K * POOL_K, R, 1), lambda i: (0, 0, 0)),
            pl.BlockSpec((R, C_out), lambda i: (0, 0)),
            pl.BlockSpec((B, R), lambda i: (0, 0)),
            pl.BlockSpec((1, 1), lambda i: (0, 0)),
        ],
        out_specs=pl.BlockSpec((B, 1), lambda i: (0, 0)),
        compiler_params=pltpu.CompilerParams(dimension_semantics=("arbitrary",)),
    )(pool_patches, w_gemm, scale2, shift2, pool_bias, fcw_tiled, sel, fcb)
    return out


# ---------------- pure-JAX reference (for correctness check) ----------------

def net1_reference(x, params):
    conv = jax.lax.conv_general_dilated(
        x, params["conv_w"], window_strides=(CONV_S, CONV_S),
        padding=((CONV_P, CONV_P), (CONV_P, CONV_P)),
        dimension_numbers=("NCHW", "OIHW", "NCHW"))
    conv = conv + params["conv_b"][None, :, None, None]
    scale = params["bn_gamma"] / jnp.sqrt(params["bn_var"] + EPS)
    y = (conv - params["bn_mean"][None, :, None, None]) * scale[None, :, None, None] \
        + params["bn_beta"][None, :, None, None]
    pooled = jax.lax.reduce_window(
        y, -jnp.inf, jax.lax.max,
        window_dimensions=(1, 1, POOL_K, POOL_K),
        window_strides=(1, 1, POOL_S, POOL_S),
        padding=((0, 0), (0, 0), (POOL_P, POOL_P), (POOL_P, POOL_P)))
    act = jnp.maximum(pooled, 0.0)
    flat = act.reshape(x.shape[0], -1)
    return jax.nn.sigmoid(flat @ params["fc_w"].T + params["fc_b"])


if __name__ == "__main__":
    key = jax.random.PRNGKey(0)
    k = jax.random.split(key, 8)
    B = 2
    # 3x32x32 input -> conv 9x9 -> pool 5x5 -> 10*5*5 = 250 = Linear in_features
    x = jax.random.normal(k[0], (B, 3, 32, 32), jnp.float32)

    params = dict(
        conv_w=0.1 * jax.random.normal(k[1], (10, 3, 3, 3), jnp.float32),
        conv_b=0.1 * jax.random.normal(k[2], (10,), jnp.float32),
        bn_gamma=1.0 + 0.1 * jax.random.normal(k[3], (10,), jnp.float32),
        bn_beta=0.1 * jax.random.normal(k[4], (10,), jnp.float32),
        bn_mean=0.1 * jax.random.normal(k[5], (10,), jnp.float32),
        bn_var=1.0 + 0.1 * jnp.abs(jax.random.normal(k[6], (10,), jnp.float32)),
        fc_w=0.05 * jax.random.normal(k[7], (1, 250), jnp.float32),
        fc_b=jnp.zeros((1,), jnp.float32),
    )

    out = jax.jit(net1_forward)(x, params)
    out = jax.block_until_ready(out)
    assert out.shape == (B, 1)
    assert bool(jnp.all(jnp.isfinite(out)))

    ref = net1_reference(x, params)
    max_err = float(jnp.max(jnp.abs(out - ref)))
    assert max_err < 1e-4, f"mismatch vs reference: {max_err}"
    print("KERNEL_OK")
</pallas_src>

<mosaic_0001>
module attributes {stable_mosaic.version = 11 : i64} {
  func.func @net1_fused_kernel(%arg0: i32, %arg1: memref<9x50x27xf32, #tpu.memory_space<vmem>>, %arg2: memref<27x10xf32, #tpu.memory_space<vmem>>, %arg3: memref<1x10xf32, #tpu.memory_space<vmem>>, %arg4: memref<1x10xf32, #tpu.memory_space<vmem>>, %arg5: memref<9x50x1xf32, #tpu.memory_space<vmem>>, %arg6: memref<50x10xf32, #tpu.memory_space<vmem>>, %arg7: memref<2x50xf32, #tpu.memory_space<vmem>>, %arg8: memref<1x1xf32, #tpu.memory_space<vmem>>, %arg9: memref<2x1xf32, #tpu.memory_space<vmem>>) attributes {dimension_semantics = [#tpu.dimension_semantics<arbitrary>], iteration_bounds = array<i64: 1>, scalar_prefetch = 0 : i64, scratch_operands = 0 : i64, tpu.core_type = #tpu.core_type<tc>, window_params = [{pipeline_mode = #tpu.pipeline_mode<synchronous>, transform_indices = @transform_0, window_bounds = array<i64: 9, 50, 27>}, {pipeline_mode = #tpu.pipeline_mode<synchronous>, transform_indices = @transform_1, window_bounds = array<i64: 27, 10>}, {pipeline_mode = #tpu.pipeline_mode<synchronous>, transform_indices = @transform_2, window_bounds = array<i64: 1, 10>}, {pipeline_mode = #tpu.pipeline_mode<synchronous>, transform_indices = @transform_3, window_bounds = array<i64: 1, 10>}, {pipeline_mode = #tpu.pipeline_mode<synchronous>, transform_indices = @transform_4, window_bounds = array<i64: 9, 50, 1>}, {pipeline_mode = #tpu.pipeline_mode<synchronous>, transform_indices = @transform_5, window_bounds = array<i64: 50, 10>}, {pipeline_mode = #tpu.pipeline_mode<synchronous>, transform_indices = @transform_6, window_bounds = array<i64: 2, 50>}, {pipeline_mode = #tpu.pipeline_mode<synchronous>, transform_indices = @transform_7, window_bounds = array<i64: 1, 1>}, {pipeline_mode = #tpu.pipeline_mode<synchronous>, transform_indices = @transform_8, window_bounds = array<i64: 2, 1>}]} {
    %c0 = arith.constant 0 : index
    %c0_0 = arith.constant 0 : index
    %0 = vector.load %arg2[%c0, %c0_0] : memref<27x10xf32, #tpu.memory_space<vmem>>, vector<27x10xf32>
    %c0_1 = arith.constant 0 : index
    %c0_2 = arith.constant 0 : index
    %1 = vector.load %arg3[%c0_1, %c0_2] : memref<1x10xf32, #tpu.memory_space<vmem>>, vector<1x10xf32>
    %c0_3 = arith.constant 0 : index
    %c0_4 = arith.constant 0 : index
    %2 = vector.load %arg4[%c0_3, %c0_4] : memref<1x10xf32, #tpu.memory_space<vmem>>, vector<1x10xf32>
    %c0_5 = arith.constant 0 : index
    %c0_6 = arith.constant 0 : index
    %c0_7 = arith.constant 0 : index
    %3 = vector.load %arg1[%c0_5, %c0_6, %c0_7] : memref<9x50x27xf32, #tpu.memory_space<vmem>>, vector<1x50x27xf32>
    %4 = vector.shape_cast %3 : vector<1x50x27xf32> to vector<50x27xf32>
    %cst = arith.constant dense<0.000000e+00> : vector<50x10xf32>
    %5 = tpu.matmul %4, %0, %cst {dimension_numbers = #tpu.dot_dimension_numbers<[1], [0], [0], [1], [0, 0, 1, 1], [], []>} : vector<50x27xf32>, vector<27x10xf32>, vector<50x10xf32> -> vector<50x10xf32>
    %6 = vector.broadcast %1 : vector<1x10xf32> to vector<50x10xf32>
    %7 = arith.mulf %5, %6 : vector<50x10xf32>
    %8 = vector.broadcast %2 : vector<1x10xf32> to vector<50x10xf32>
    %9 = arith.addf %7, %8 : vector<50x10xf32>
    %c0_8 = arith.constant 0 : index
    %c0_9 = arith.constant 0 : index
    %c0_10 = arith.constant 0 : index
    %10 = vector.load %arg5[%c0_8, %c0_9, %c0_10] : memref<9x50x1xf32, #tpu.memory_space<vmem>>, vector<1x50x1xf32>
    %11 = vector.shape_cast %10 : vector<1x50x1xf32> to vector<50x1xf32>
    %12 = vector.broadcast %11 : vector<50x1xf32> to vector<50x10xf32>
    %13 = arith.addf %9, %12 : vector<50x10xf32>
    %c1 = arith.constant 1 : index
    %c0_11 = arith.constant 0 : index
    %c0_12 = arith.constant 0 : index
    %14 = vector.load %arg1[%c1, %c0_11, %c0_12] : memref<9x50x27xf32, #tpu.memory_space<vmem>>, vector<1x50x27xf32>
    %15 = vector.shape_cast %14 : vector<1x50x27xf32> to vector<50x27xf32>
    %cst_13 = arith.constant dense<0.000000e+00> : vector<50x10xf32>
    %16 = tpu.matmul %15, %0, %cst_13 {dimension_numbers = #tpu.dot_dimension_numbers<[1], [0], [0], [1], [0, 0, 1, 1], [], []>} : vector<50x27xf32>, vector<27x10xf32>, vector<50x10xf32> -> vector<50x10xf32>
    %17 = vector.broadcast %1 : vector<1x10xf32> to vector<50x10xf32>
    %18 = arith.mulf %16, %17 : vector<50x10xf32>
    %19 = vector.broadcast %2 : vector<1x10xf32> to vector<50x10xf32>
    %20 = arith.addf %18, %19 : vector<50x10xf32>
    %c1_14 = arith.constant 1 : index
    %c0_15 = arith.constant 0 : index
    %c0_16 = arith.constant 0 : index
    %21 = vector.load %arg5[%c1_14, %c0_15, %c0_16] : memref<9x50x1xf32, #tpu.memory_space<vmem>>, vector<1x50x1xf32>
    %22 = vector.shape_cast %21 : vector<1x50x1xf32> to vector<50x1xf32>
    %23 = vector.broadcast %22 : vector<50x1xf32> to vector<50x10xf32>
    %24 = arith.addf %20, %23 : vector<50x10xf32>
    %25 = arith.maximumf %13, %24 : vector<50x10xf32>
    %c2 = arith.constant 2 : index
    %c0_17 = arith.constant 0 : index
    %c0_18 = arith.constant 0 : index
    %26 = vector.load %arg1[%c2, %c0_17, %c0_18] : memref<9x50x27xf32, #tpu.memory_space<vmem>>, vector<1x50x27xf32>
    %27 = vector.shape_cast %26 : vector<1x50x27xf32> to vector<50x27xf32>
    %cst_19 = arith.constant dense<0.000000e+00> : vector<50x10xf32>
    %28 = tpu.matmul %27, %0, %cst_19 {dimension_numbers = #tpu.dot_dimension_numbers<[1], [0], [0], [1], [0, 0, 1, 1], [], []>} : vector<50x27xf32>, vector<27x10xf32>, vector<50x10xf32> -> vector<50x10xf32>
    %29 = vector.broadcast %1 : vector<1x10xf32> to vector<50x10xf32>
    %30 = arith.mulf %28, %29 : vector<50x10xf32>
    %31 = vector.broadcast %2 : vector<1x10xf32> to vector<50x10xf32>
    %32 = arith.addf %30, %31 : vector<50x10xf32>
    %c2_20 = arith.constant 2 : index
    %c0_21 = arith.constant 0 : index
    %c0_22 = arith.constant 0 : index
    %33 = vector.load %arg5[%c2_20, %c0_21, %c0_22] : memref<9x50x1xf32, #tpu.memory_space<vmem>>, vector<1x50x1xf32>
    %34 = vector.shape_cast %33 : vector<1x50x1xf32> to vector<50x1xf32>
    %35 = vector.broadcast %34 : vector<50x1xf32> to vector<50x10xf32>
    %36 = arith.addf %32, %35 : vector<50x10xf32>
    %37 = arith.maximumf %25, %36 : vector<50x10xf32>
    %c3 = arith.constant 3 : index
    %c0_23 = arith.constant 0 : index
    %c0_24 = arith.constant 0 : index
    %38 = vector.load %arg1[%c3, %c0_23, %c0_24] : memref<9x50x27xf32, #tpu.memory_space<vmem>>, vector<1x50x27xf32>
    %39 = vector.shape_cast %38 : vector<1x50x27xf32> to vector<50x27xf32>
    %cst_25 = arith.constant dense<0.000000e+00> : vector<50x10xf32>
    %40 = tpu.matmul %39, %0, %cst_25 {dimension_numbers = #tpu.dot_dimension_numbers<[1], [0], [0], [1], [0, 0, 1, 1], [], []>} : vector<50x27xf32>, vector<27x10xf32>, vector<50x10xf32> -> vector<50x10xf32>
    %41 = vector.broadcast %1 : vector<1x10xf32> to vector<50x10xf32>
    %42 = arith.mulf %40, %41 : vector<50x10xf32>
    %43 = vector.broadcast %2 : vector<1x10xf32> to vector<50x10xf32>
    %44 = arith.addf %42, %43 : vector<50x10xf32>
    %c3_26 = arith.constant 3 : index
    %c0_27 = arith.constant 0 : index
    %c0_28 = arith.constant 0 : index
    %45 = vector.load %arg5[%c3_26, %c0_27, %c0_28] : memref<9x50x1xf32, #tpu.memory_space<vmem>>, vector<1x50x1xf32>
    %46 = vector.shape_cast %45 : vector<1x50x1xf32> to vector<50x1xf32>
    %47 = vector.broadcast %46 : vector<50x1xf32> to vector<50x10xf32>
    %48 = arith.addf %44, %47 : vector<50x10xf32>
    %49 = arith.maximumf %37, %48 : vector<50x10xf32>
    %c4 = arith.constant 4 : index
    %c0_29 = arith.constant 0 : index
    %c0_30 = arith.constant 0 : index
    %50 = vector.load %arg1[%c4, %c0_29, %c0_30] : memref<9x50x27xf32, #tpu.memory_space<vmem>>, vector<1x50x27xf32>
    %51 = vector.shape_cast %50 : vector<1x50x27xf32> to vector<50x27xf32>
    %cst_31 = arith.constant dense<0.000000e+00> : vector<50x10xf32>
    %52 = tpu.matmul %51, %0, %cst_31 {dimension_numbers = #tpu.dot_dimension_numbers<[1], [0], [0], [1], [0, 0, 1, 1], [], []>} : vector<50x27xf32>, vector<27x10xf32>, vector<50x10xf32> -> vector<50x10xf32>
    %53 = vector.broadcast %1 : vector<1x10xf32> to vector<50x10xf32>
    %54 = arith.mulf %52, %53 : vector<50x10xf32>
    %55 = vector.broadcast %2 : vector<1x10xf32> to vector<50x10xf32>
    %56 = arith.addf %54, %55 : vector<50x10xf32>
    %c4_32 = arith.constant 4 : index
    %c0_33 = arith.constant 0 : index
    %c0_34 = arith.constant 0 : index
    %57 = vector.load %arg5[%c4_32, %c0_33, %c0_34] : memref<9x50x1xf32, #tpu.memory_space<vmem>>, vector<1x50x1xf32>
    %58 = vector.shape_cast %57 : vector<1x50x1xf32> to vector<50x1xf32>
    %59 = vector.broadcast %58 : vector<50x1xf32> to vector<50x10xf32>
    %60 = arith.addf %56, %59 : vector<50x10xf32>
    %61 = arith.maximumf %49, %60 : vector<50x10xf32>
    %c5 = arith.constant 5 : index
    %c0_35 = arith.constant 0 : index
    %c0_36 = arith.constant 0 : index
    %62 = vector.load %arg1[%c5, %c0_35, %c0_36] : memref<9x50x27xf32, #tpu.memory_space<vmem>>, vector<1x50x27xf32>
    %63 = vector.shape_cast %62 : vector<1x50x27xf32> to vector<50x27xf32>
    %cst_37 = arith.constant dense<0.000000e+00> : vector<50x10xf32>
    %64 = tpu.matmul %63, %0, %cst_37 {dimension_numbers = #tpu.dot_dimension_numbers<[1], [0], [0], [1], [0, 0, 1, 1], [], []>} : vector<50x27xf32>, vector<27x10xf32>, vector<50x10xf32> -> vector<50x10xf32>
    %65 = vector.broadcast %1 : vector<1x10xf32> to vector<50x10xf32>
    %66 = arith.mulf %64, %65 : vector<50x10xf32>
    %67 = vector.broadcast %2 : vector<1x10xf32> to vector<50x10xf32>
    %68 = arith.addf %66, %67 : vector<50x10xf32>
    %c5_38 = arith.constant 5 : index
    %c0_39 = arith.constant 0 : index
    %c0_40 = arith.constant 0 : index
    %69 = vector.load %arg5[%c5_38, %c0_39, %c0_40] : memref<9x50x1xf32, #tpu.memory_space<vmem>>, vector<1x50x1xf32>
    %70 = vector.shape_cast %69 : vector<1x50x1xf32> to vector<50x1xf32>
    %71 = vector.broadcast %70 : vector<50x1xf32> to vector<50x10xf32>
    %72 = arith.addf %68, %71 : vector<50x10xf32>
    %73 = arith.maximumf %61, %72 : vector<50x10xf32>
    %c6 = arith.constant 6 : index
    %c0_41 = arith.constant 0 : index
    %c0_42 = arith.constant 0 : index
    %74 = vector.load %arg1[%c6, %c0_41, %c0_42] : memref<9x50x27xf32, #tpu.memory_space<vmem>>, vector<1x50x27xf32>
    %75 = vector.shape_cast %74 : vector<1x50x27xf32> to vector<50x27xf32>
    %cst_43 = arith.constant dense<0.000000e+00> : vector<50x10xf32>
    %76 = tpu.matmul %75, %0, %cst_43 {dimension_numbers = #tpu.dot_dimension_numbers<[1], [0], [0], [1], [0, 0, 1, 1], [], []>} : vector<50x27xf32>, vector<27x10xf32>, vector<50x10xf32> -> vector<50x10xf32>
    %77 = vector.broadcast %1 : vector<1x10xf32> to vector<50x10xf32>
    %78 = arith.mulf %76, %77 : vector<50x10xf32>
    %79 = vector.broadcast %2 : vector<1x10xf32> to vector<50x10xf32>
    %80 = arith.addf %78, %79 : vector<50x10xf32>
    %c6_44 = arith.constant 6 : index
    %c0_45 = arith.constant 0 : index
    %c0_46 = arith.constant 0 : index
    %81 = vector.load %arg5[%c6_44, %c0_45, %c0_46] : memref<9x50x1xf32, #tpu.memory_space<vmem>>, vector<1x50x1xf32>
    %82 = vector.shape_cast %81 : vector<1x50x1xf32> to vector<50x1xf32>
    %83 = vector.broadcast %82 : vector<50x1xf32> to vector<50x10xf32>
    %84 = arith.addf %80, %83 : vector<50x10xf32>
    %85 = arith.maximumf %73, %84 : vector<50x10xf32>
    %c7 = arith.constant 7 : index
    %c0_47 = arith.constant 0 : index
    %c0_48 = arith.constant 0 : index
    %86 = vector.load %arg1[%c7, %c0_47, %c0_48] : memref<9x50x27xf32, #tpu.memory_space<vmem>>, vector<1x50x27xf32>
    %87 = vector.shape_cast %86 : vector<1x50x27xf32> to vector<50x27xf32>
    %cst_49 = arith.constant dense<0.000000e+00> : vector<50x10xf32>
    %88 = tpu.matmul %87, %0, %cst_49 {dimension_numbers = #tpu.dot_dimension_numbers<[1], [0], [0], [1], [0, 0, 1, 1], [], []>} : vector<50x27xf32>, vector<27x10xf32>, vector<50x10xf32> -> vector<50x10xf32>
    %89 = vector.broadcast %1 : vector<1x10xf32> to vector<50x10xf32>
    %90 = arith.mulf %88, %89 : vector<50x10xf32>
    %91 = vector.broadcast %2 : vector<1x10xf32> to vector<50x10xf32>
    %92 = arith.addf %90, %91 : vector<50x10xf32>
    %c7_50 = arith.constant 7 : index
    %c0_51 = arith.constant 0 : index
    %c0_52 = arith.constant 0 : index
    %93 = vector.load %arg5[%c7_50, %c0_51, %c0_52] : memref<9x50x1xf32, #tpu.memory_space<vmem>>, vector<1x50x1xf32>
    %94 = vector.shape_cast %93 : vector<1x50x1xf32> to vector<50x1xf32>
    %95 = vector.broadcast %94 : vector<50x1xf32> to vector<50x10xf32>
    %96 = arith.addf %92, %95 : vector<50x10xf32>
    %97 = arith.maximumf %85, %96 : vector<50x10xf32>
    %c8 = arith.constant 8 : index
    %c0_53 = arith.constant 0 : index
    %c0_54 = arith.constant 0 : index
    %98 = vector.load %arg1[%c8, %c0_53, %c0_54] : memref<9x50x27xf32, #tpu.memory_space<vmem>>, vector<1x50x27xf32>
    %99 = vector.shape_cast %98 : vector<1x50x27xf32> to vector<50x27xf32>
    %cst_55 = arith.constant dense<0.000000e+00> : vector<50x10xf32>
    %100 = tpu.matmul %99, %0, %cst_55 {dimension_numbers = #tpu.dot_dimension_numbers<[1], [0], [0], [1], [0, 0, 1, 1], [], []>} : vector<50x27xf32>, vector<27x10xf32>, vector<50x10xf32> -> vector<50x10xf32>
    %101 = vector.broadcast %1 : vector<1x10xf32> to vector<50x10xf32>
    %102 = arith.mulf %100, %101 : vector<50x10xf32>
    %103 = vector.broadcast %2 : vector<1x10xf32> to vector<50x10xf32>
    %104 = arith.addf %102, %103 : vector<50x10xf32>
    %c8_56 = arith.constant 8 : index
    %c0_57 = arith.constant 0 : index
    %c0_58 = arith.constant 0 : index
    %105 = vector.load %arg5[%c8_56, %c0_57, %c0_58] : memref<9x50x1xf32, #tpu.memory_space<vmem>>, vector<1x50x1xf32>
    %106 = vector.shape_cast %105 : vector<1x50x1xf32> to vector<50x1xf32>
    %107 = vector.broadcast %106 : vector<50x1xf32> to vector<50x10xf32>
    %108 = arith.addf %104, %107 : vector<50x10xf32>
    %109 = arith.maximumf %97, %108 : vector<50x10xf32>
    %cst_59 = arith.constant 0.000000e+00 : f32
    %110 = vector.broadcast %cst_59 : f32 to vector<50x10xf32>
    %111 = arith.maximumf %109, %110 : vector<50x10xf32>
    %c0_60 = arith.constant 0 : index
    %c0_61 = arith.constant 0 : index
    %112 = vector.load %arg6[%c0_60, %c0_61] : memref<50x10xf32, #tpu.memory_space<vmem>>, vector<50x10xf32>
    %113 = arith.mulf %111, %112 : vector<50x10xf32>
    %c0_62 = arith.constant 0 : index
    %c0_63 = arith.constant 0 : index
    %114 = vector.load %arg7[%c0_62, %c0_63] : memref<2x50xf32, #tpu.memory_space<vmem>>, vector<2x50xf32>
    %cst_64 = arith.constant dense<0.000000e+00> : vector<2x10xf32>
    %115 = tpu.matmul %114, %113, %cst_64 {dimension_numbers = #tpu.dot_dimension_numbers<[1], [0], [0], [1], [0, 0, 1, 1], [], []>} : vector<2x50xf32>, vector<50x10xf32>, vector<2x10xf32> -> vector<2x10xf32>
    %cst_65 = arith.constant dense<0.000000e+00> : vector<2xf32>
    %116 = vector.multi_reduction <add>, %115, %cst_65 [1] : vector<2x10xf32> to vector<2xf32>
    %117 = vector.shape_cast %116 : vector<2xf32> to vector<2x1xf32>
    %c0_66 = arith.constant 0 : index
    %c0_67 = arith.constant 0 : index
    %118 = vector.load %arg8[%c0_66, %c0_67] : memref<1x1xf32, #tpu.memory_space<vmem>>, vector<1x1xf32>
    %119 = vector.broadcast %118 : vector<1x1xf32> to vector<2x1xf32>
    %120 = arith.addf %117, %119 : vector<2x1xf32>
    %121 = arith.negf %120 : vector<2x1xf32>
    %122 = math.exp %121 : vector<2x1xf32>
    %cst_68 = arith.constant 1.000000e+00 : f32
    %123 = vector.broadcast %cst_68 : f32 to vector<2x1xf32>
    %124 = arith.addf %123, %122 : vector<2x1xf32>
    %125 = arith.divf %123, %124 : vector<2x1xf32>
    %c0_69 = arith.constant 0 : index
    %c0_70 = arith.constant 0 : index
    %126 = vector.load %arg9[%c0_69, %c0_70] : memref<2x1xf32, #tpu.memory_space<vmem>>, vector<2x1xf32>
    tpu.vector_store %arg9[%c0_69, %c0_70], %125 {strides = array<i32>} : memref<2x1xf32, #tpu.memory_space<vmem>>, vector<2x1xf32>,
    return
  }
  func.func @transform_0(%arg0: i32) -> (i32, i32, i32) {
    %c0_i32 = arith.constant 0 : i32
    %c0_i32_0 = arith.constant 0 : i32
    %c0_i32_1 = arith.constant 0 : i32
    %c0_i32_2 = arith.constant 0 : i32
    return %c0_i32, %c0_i32_0, %c0_i32_1 : i32, i32, i32
  }
  func.func @transform_1(%arg0: i32) -> (i32, i32) {
    %c0_i32 = arith.constant 0 : i32
    %c0_i32_0 = arith.constant 0 : i32
    %c0_i32_1 = arith.constant 0 : i32
    return %c0_i32, %c0_i32_0 : i32, i32
  }
  func.func @transform_2(%arg0: i32) -> (i32, i32) {
    %c0_i32 = arith.constant 0 : i32
    %c0_i32_0 = arith.constant 0 : i32
    %c0_i32_1 = arith.constant 0 : i32
    return %c0_i32, %c0_i32_0 : i32, i32
  }
  func.func @transform_3(%arg0: i32) -> (i32, i32) {
    %c0_i32 = arith.constant 0 : i32
    %c0_i32_0 = arith.constant 0 : i32
    %c0_i32_1 = arith.constant 0 : i32
    return %c0_i32, %c0_i32_0 : i32, i32
  }
  func.func @transform_4(%arg0: i32) -> (i32, i32, i32) {
    %c0_i32 = arith.constant 0 : i32
    %c0_i32_0 = arith.constant 0 : i32
    %c0_i32_1 = arith.constant 0 : i32
    %c0_i32_2 = arith.constant 0 : i32
    return %c0_i32, %c0_i32_0, %c0_i32_1 : i32, i32, i32
  }
  func.func @transform_5(%arg0: i32) -> (i32, i32) {
    %c0_i32 = arith.constant 0 : i32
    %c0_i32_0 = arith.constant 0 : i32
    %c0_i32_1 = arith.constant 0 : i32
    return %c0_i32, %c0_i32_0 : i32, i32
  }
  func.func @transform_6(%arg0: i32) -> (i32, i32) {
    %c0_i32 = arith.constant 0 : i32
    %c0_i32_0 = arith.constant 0 : i32
    %c0_i32_1 = arith.constant 0 : i32
    return %c0_i32, %c0_i32_0 : i32, i32
  }
  func.func @transform_7(%arg0: i32) -> (i32, i32) {
    %c0_i32 = arith.constant 0 : i32
    %c0_i32_0 = arith.constant 0 : i32
    %c0_i32_1 = arith.constant 0 : i32
    return %c0_i32, %c0_i32_0 : i32, i32
  }
  func.func @transform_8(%arg0: i32) -> (i32, i32) {
    %c0_i32 = arith.constant 0 : i32
    %c0_i32_0 = arith.constant 0 : i32
    %c0_i32_1 = arith.constant 0 : i32
    return %c0_i32, %c0_i32_0 : i32, i32
  }
}

</mosaic_0001>

<bundles_post_ra>
// kernel: tile.17
= control target key start
LH: loop header
LB: loop body
LE: loop exit
PB: predicated region body
PF: predicated region fallthrough
CT: control target
= control target key end

     0   :  { %vm52_vm0 = vcmask 1047556   ;;  %vm54_vm1 = vcmask 203776   ;;  %s57_s26 = smov 3  ;;  %s100_s27 = smov 25   ;;  %vm70_vm2 = vcmask 408776   ;;  %s153_s0 = inlined_call_operand.vmem [shape: f32[2,25,10], index: 0, kind: input, shape index: {}]   ;;  %s154_s1 = inlined_call_operand.vmem [shape: f32[50,10], index: 1, kind: output, shape index: {}]  }
   0x1   :  { %v90_v0 = vld [vmem:[%s153_s0 + $0xe] sm:$0x3]  ;;  %v91_v1 = vld [vmem:[%s153_s0 + $0xc] sm:$0x3]  ;;  %v92_v2 = vld [vmem:[%s153_s0 + $0xa] sm:$0x3] }
   0x2   :  { %18 = vst [vmem:[#allocation0 + $0x38] sm:$0x3] %v90_v0  ;;  %23 = vst [vmem:[#allocation0 + $0x30] sm:$0x3] %v91_v1  ;;  %v93_v3 = vld [vmem:[%s153_s0 + $0x8] sm:$0x3] }
   0x3   :  { %28 = vst [vmem:[#allocation0 + $0x28] sm:$0x3] %v92_v2  ;;  %v94_v4 = vld [vmem:[%s153_s0 + $0x6] sm:$0x3]  ;;  %v95_v5 = vld [vmem:[%s153_s0 + $0x4] sm:$0x3] }
   0x4   :  { %33 = vst [vmem:[#allocation0 + $0x20] sm:$0x3] %v93_v3  ;;  %38 = vst [vmem:[#allocation0 + $0x18] sm:$0x3] %v94_v4  ;;  %v96_v6 = vld [vmem:[%s153_s0 + $0x2] sm:$0x3] }
   0x5   :  { %43 = vst [vmem:[#allocation0 + $0x10] sm:$0x3] %v95_v5  ;;  %v48_v7 = vld [vmem:[%s153_s0] sm:$0x3]  ;;  %47 = vst [vmem:[#allocation0 + $0x8] sm:$0x3] %v96_v6 }
   0x6   :  { %49 = vst [vmem:[#allocation0] sm:$0x3] %v48_v7  ;;  %v88_v8 = vld [vmem:[%s153_s0 + $0x12] sm:$0x3]  ;;  %v89_v9 = vld [vmem:[%s153_s0 + $0x10] sm:$0x3] }
   0x7   :  { %8 = vst [vmem:[#allocation0 + $0x48] sm:$0x3] %v88_v8  ;;  %13 = vst [vmem:[#allocation0 + $0x40] sm:$0x3] %v89_v9  ;;  %s73_s0 = smov 3 }
   0xb   :  { %v65_v10 = vld [vmem:[#allocation0 + $0x1] ss:$8 sm:$0xf0]   ;;  %v51_v11 = vld [vmem:[#allocation0] ss:$8 sm:$0xf0]  }
   0xd   :  { %v50_v12 = vld [vmem:[#allocation0] ss:$8 sm:$0xf]   ;;  %v63_v13 = vld [vmem:[#allocation0 + $0x1] ss:$8 sm:$0xf]  }
   0xe   :  { %v67_v14 = vsel %vm52_vm0, %v65_v10, %v63_v13  ;;  %v53_v15 = vsel %vm52_vm0, %v51_v11, %v50_v12  ;;  %v58_v16 = vld [vmem:[#allocation0 + $0x40] ss:$8 sm:%s57_s26]   ;;  %v74_v17 = vld [vmem:[#allocation0 + $0x41] ss:$8 sm:%s73_s0]  }
   0xf   :  { %68 = vrot.lane.b32.xlu0 %v67_v14, %s100_s27  ;;  %55 = vst.msk [vmem:[%s154_s1] sm:$0xff] %vm54_vm1, %v53_v15   ;;  %97 = vst.msk [vmem:[%s154_s1 + $0x8] sm:$0x3] %vm54_vm1, %v58_v16  }
  0x13   :  { %75 = vrot.lane.b32.xlu0 %v74_v17, %s100_s27 }
  0x81   :  { %v69_v18 = vpop.permute.xlu0 %68  }
  0x82   :  { %71 = vst.msk [vmem:[%s154_s1] sm:$0xff] %vm70_vm2, %v69_v18  }
  0x85   :  { %v76_v19 = vpop.permute.xlu0 %75  }
  0x86   :  { %98 = vst.msk [vmem:[%s154_s1 + $0x8] sm:$0x3] %vm70_vm2, %v76_v19  }

// kernel: net1_forward.1
= control target key start
LH: loop header
LB: loop body
LE: loop exit
PB: predicated region body
PF: predicated region fallthrough
CT: control target
= control target key end

     0   :  { %v2631_v0 = vmov 0   ;;  %v2632_v6 = vmov 0.0|0.0   ;;  %vm66_vm0 = vcmask 1042432   ;;  %vm2633_vm1 = vmmov 0   ;;  %s3734_s4 = inlined_call_operand.vmem [shape: f32[9,50,1], index: 4, kind: input, shape index: {}]   ;;  %s3735_s1 = inlined_call_operand.vmem [shape: f32[27,10], index: 1, kind: input, shape index: {}]   ;;  %s3736_s0 = inlined_call_operand.vmem [shape: f32[9,50,27], index: 0, kind: input, shape index: {}]   ;;  %s3737_s2 = inlined_call_operand.vmem [shape: f32[1,10], index: 2, kind: input, shape index: {}]   ;;  %s3738_s3 = inlined_call_operand.vmem [shape: f32[1,10], index: 3, kind: input, shape index: {}]   ;;  %s3739_s5 = inlined_call_operand.vmem [shape: f32[50,10], index: 5, kind: input, shape index: {}]   ;;  %s3740_s6 = inlined_call_operand.vmem [shape: f32[2,50], index: 6, kind: input, shape index: {}]   ;;  %s3741_s7 = inlined_call_operand.<no memory space> [shape: f32[1,1], index: 7, kind: input, shape index: {}]   ;;  %s3742_s8 = inlined_call_operand.vmem [shape: f32[2,1], index: 8, kind: output, shape index: {}]  }
   0x1   :  { %2626 = vset.pattern.permute.xlu1 %v2631_v0  ;;  %2625 = vset.pattern.permute.xlu0 %v2631_v0  ;;  %v1994_v1 = vld [vmem:[%s3734_s4 + $0x38] sm:$0xff]  ;;  %v196_v2 = vld [vmem:[%s3734_s4] sm:$0xff]  ;;  %v32_v4 = vld [vmem:[%s3735_s1 + $0x8] sm:$0xff]  ;;  %v3743_v11 = vmov 0.0   ;;  %vm2635_vm2 = vmmov 1   ;;  %vm44_vm4 = vcmask 220160  }
   0x2   :  { %v31_v3 = vld [vmem:[%s3735_s1] sm:$0xff]  ;;  %398 = vperm.xlu1 %2626, %v1994_v1   ;;  %205 = vperm.xlu0 %2625, %v196_v2   ;;  %v197_v8 = vld [vmem:[%s3734_s4 + $0x8] sm:$0xff]  ;;  %v33_v9 = vld [vmem:[%s3735_s1 + $0x10] sm:$0xff]  ;;  %vm1871_vm5 = vcmask 1041408   ;;  %vm1867_vm6 = vcmask 408576   ;;  %vm1945_vm7 = vcmask 74752  }
   0x3   :  { %v1995_v5 = vld [vmem:[%s3734_s4 + $0x40] sm:$0xff]  ;;  %2544 = vmatprep.subr.bf16.mxu0 %v2632_v6  ;;  %2616 = vmatprep.subr.bf16.mxu1 %v2632_v6  ;;  %v2698_v7 = vpack.c.bf16 %v32_v4, %v31_v3  ;;  %v34_v10 = vld [vmem:[%s3735_s1 + $0x18] sm:$0x7]  ;;  %vm2717_vm3 = vmpackc.low %vm66_vm0, %vm2635_vm2  ;;  %vm1963_vm8 = vcmask 1024  }
   0x4   :  { %2274 = vmatprep.mubr.msk.f32.mxu0 %vm2633_vm1, %v3743_v11  ;;  %2286 = vmatprep.mubr.msk.f32.mxu1 %vm2633_vm1, %v3743_v11  ;;  %v2715_v12 = vpack.c.bf16 %v34_v10, %v33_v9  ;;  %v2017_v14 = vld [vmem:[%s3734_s4 + $0x78] sm:$0xff]  ;;  %v2016_v15 = vld [vmem:[%s3734_s4 + $0x70] sm:$0xff]  ;;  %v37_v16 = vld [vmem:[%s3736_s0] sm:$0xff] }
   0x5   :  { %2546 = vmatpush3.bf16.msra.mxu0 %v2698_v7  ;;  %2618 = vmatpush3.bf16.msra.mxu1 %v2698_v7  ;;  %v41_v17 = vld [vmem:[%s3736_s0 + $0x20] sm:$0xff]  ;;  %v199_v18 = vld [vmem:[%s3734_s4 + $0x18] sm:$0xff]  ;;  %v198_v19 = vld [vmem:[%s3734_s4 + $0x10] sm:$0xff] }
   0x6   :  { %403 = vperm.xlu1 %2626, %v1995_v5   ;;  %210 = vperm.xlu0 %2625, %v197_v8   ;;  %v38_v20 = vld [vmem:[%s3736_s0 + $0x8] sm:$0xff]  ;;  %v1997_v22 = vld [vmem:[%s3734_s4 + $0x50] sm:$0xff]  ;;  %v40_v28 = vld [vmem:[%s3736_s0 + $0x18] sm:$0xff] }
   0x7   :  { %2547 = vmatprep.subr.bf16.mxu0 %v2632_v6  ;;  %2617 = vmatprep.subr.bf16.mxu1 %v2632_v6  ;;  %v42_v21 = vld [vmem:[%s3736_s0 + $0x28] sm:$0xff]  ;;  %v39_v24 = vld [vmem:[%s3736_s0 + $0x10] sm:$0xff]  ;;  %v1979_v29 = vld [vmem:[%s3736_s0 + $0x38] sm:$0xff] }
   0x8   :  { %v1996_v23 = vld [vmem:[%s3734_s4 + $0x48] sm:$0xff]  ;;  %v43_v25 = vld [vmem:[%s3736_s0 + $0x30] sm:$0x3]  ;;  %v2018_v31 = vld [vmem:[%s3734_s4 + $0x80] sm:$0xff] }
   0x9   :  { %2550 = vmatpush3.bf16.msk.msra.mxu0 %vm2717_vm3, %v2715_v12  ;;  %2619 = vmatpush3.bf16.msk.msra.mxu1 %vm2717_vm3, %v2715_v12  ;;  %v2039_v26 = vld [vmem:[%s3734_s4 + $0xb0] sm:$0xff]  ;;  %v2038_v27 = vld [vmem:[%s3734_s4 + $0xa8] sm:$0xff]  ;;  %v1980_v32 = vld [vmem:[%s3736_s0 + $0x40] sm:$0xff] }
   0xa   :  { %603 = vperm.xlu1 %2626, %v2017_v14   ;;  %598 = vperm.xlu0 %2625, %v2016_v15   ;;  %v2019_v30 = vld [vmem:[%s3734_s4 + $0x88] sm:$0xff]  ;;  %v2001_v33 = vld [vmem:[%s3736_s0 + $0x70] sm:$0xff]  ;;  %v2060_v35 = vld [vmem:[%s3734_s4 + $0xe0] sm:$0xff] }
   0xb   :  { %2551 = vmatprep.subr.bf16.mxu1 %v2632_v6  ;;  %2558 = vmatprep.subr.bf16.mxu0 %v2632_v6  ;;  %v2061_v34 = vld [vmem:[%s3734_s4 + $0xe8] sm:$0xff]  ;;  %v2002_v37 = vld [vmem:[%s3736_s0 + $0x78] sm:$0xff]  ;;  %v200_v39 = vld [vmem:[%s3734_s4 + $0x20] sm:$0xff] }
   0xc   :  { %2275 = vmatmul.mubr.msk.f32.vlgmr.msra.gmra.mrb[0].mxu0 %vm44_vm4, %v37_v16  ;;  %2287 = vmatmul.mubr.msk.f32.vlgmr.msra.gmra.mrb[0].mxu1 %vm44_vm4, %v41_v17  ;;  %v1981_v36 = vld [vmem:[%s3736_s0 + $0x48] sm:$0xff]  ;;  %v1982_v40 = vld [vmem:[%s3736_s0 + $0x50] sm:$0xff]  ;;  %v2003_v41 = vld [vmem:[%s3736_s0 + $0x80] sm:$0xff] }
   0xd   :  { %2277 = vmatprep.mubr.msk.f32.mxu0 %vm2633_vm1, %v3743_v11  ;;  %2289 = vmatprep.mubr.msk.f32.mxu1 %vm2633_vm1, %v3743_v11  ;;  %v201_v38 = vld [vmem:[%s3734_s4 + $0x28] sm:$0xff]  ;;  %v1999_v42 = vld [vmem:[%s3734_s4 + $0x60] sm:$0xff]  ;;  %v1998_v43 = vld [vmem:[%s3734_s4 + $0x58] sm:$0xff] }
   0xe   :  { %220 = vperm.xlu1 %2626, %v199_v18   ;;  %215 = vperm.xlu0 %2625, %v198_v19   ;;  %v1983_v44 = vld [vmem:[%s3736_s0 + $0x58] sm:$0xff]  ;;  %v2004_v45 = vld [vmem:[%s3736_s0 + $0x88] sm:$0xff]  ;;  %v2041_v46 = vld [vmem:[%s3734_s4 + $0xc0] sm:$0xff] }
   0xf   :  { %2553 = vmatpush3.bf16.msra.mxu1 %v2698_v7  ;;  %2560 = vmatpush3.bf16.msra.mxu0 %v2698_v7  ;;  %v2040_v47 = vld [vmem:[%s3734_s4 + $0xb8] sm:$0xff]  ;;  %v1984_v48 = vld [vmem:[%s3736_s0 + $0x60] sm:$0xff]  ;;  %v2005_v49 = vld [vmem:[%s3736_s0 + $0x90] sm:$0xff] }
  0x10   :  { %2278 = vmatmul.mubr.msk.f32.gmra.mrb[2].mxu0 %vm44_vm4, %v38_v20  ;;  %2290 = vmatmul.mubr.msk.f32.gmra.mrb[2].mxu1 %vm44_vm4, %v42_v21  ;;  %v2083_v50 = vld [vmem:[%s3734_s4 + $0x120] sm:$0xff]  ;;  %v2082_v51 = vld [vmem:[%s3734_s4 + $0x118] sm:$0xff]  ;;  %v1985_v52 = vld [vmem:[%s3736_s0 + $0x68] sm:$0x3] }
  0x11   :  { %2280 = vmatprep.mubr.msk.f32.mxu0 %vm2633_vm1, %v3743_v11  ;;  %2292 = vmatprep.mubr.msk.f32.mxu1 %vm2633_vm1, %v3743_v11  ;;  %v2006_v53 = vld [vmem:[%s3736_s0 + $0x98] sm:$0xff]  ;;  %v2020_v55 = vld [vmem:[%s3734_s4 + $0x90] sm:$0xff]  ;;  %v2007_v56 = vld [vmem:[%s3736_s0 + $0xa0] sm:$0x3] }
  0x12   :  { %413 = vperm.xlu1 %2626, %v1997_v22   ;;  %408 = vperm.xlu0 %2625, %v1996_v23   ;;  %v2021_v54 = vld [vmem:[%s3734_s4 + $0x98] sm:$0xff]  ;;  %v2023_v57 = vld [vmem:[%s3736_s0 + $0xa8] sm:$0xff]  ;;  %v2062_v59 = vld [vmem:[%s3734_s4 + $0xf0] sm:$0xff] }
  0x13   :  { %2554 = vmatprep.subr.bf16.mxu1 %v2632_v6  ;;  %2561 = vmatprep.subr.bf16.mxu0 %v2632_v6  ;;  %v2063_v58 = vld [vmem:[%s3734_s4 + $0xf8] sm:$0xff]  ;;  %v2024_v60 = vld [vmem:[%s3736_s0 + $0xb0] sm:$0xff]  ;;  %v2045_v61 = vld [vmem:[%s3736_s0 + $0xe0] sm:$0xff] }
  0x14   :  { %2281 = vmatmul.mubr.msk.f32.gmra.mrb[4].mxu0 %vm44_vm4, %v39_v24  ;;  %2293 = vmatmul.mubr.msk.f32.gmra.mrb[4].mxu1 %vm44_vm4, %v43_v25  ;;  %v2105_v62 = vld [vmem:[%s3734_s4 + $0x158] sm:$0xff]  ;;  %v2104_v63 = vld [vmem:[%s3734_s4 + $0x150] sm:$0xff]  ;;  %v2046_v1 = vld [vmem:[%s3736_s0 + $0xe8] sm:$0xff] }
  0x15   :  { %2557 = vmatpush3.bf16.msk.msra.mxu1 %vm2717_vm3, %v2715_v12  ;;  %2283 = vmatprep.mubr.msk.f32.mxu0 %vm2633_vm1, %v3743_v11  ;;  %v2025_v0 = vld [vmem:[%s3736_s0 + $0xb8] sm:$0xff]  ;;  %v2043_v2 = vld [vmem:[%s3734_s4 + $0xd0] sm:$0xff]  ;;  %v2042_v3 = vld [vmem:[%s3734_s4 + $0xc8] sm:$0xff] }
  0x16   :  { %803 = vperm.xlu1 %2626, %v2039_v26   ;;  %798 = vperm.xlu0 %2625, %v2038_v27   ;;  %v2026_v4 = vld [vmem:[%s3736_s0 + $0xc0] sm:$0xff]  ;;  %v2047_v5 = vld [vmem:[%s3736_s0 + $0xf0] sm:$0xff]  ;;  %v2084_v9 = vld [vmem:[%s3734_s4 + $0x128] sm:$0xff] }
  0x17   :  { %2303 = vmatprep.mubr.msk.f32.mxu1 %vm2633_vm1, %v3743_v11  ;;  %2564 = vmatpush3.bf16.msk.msra.mxu0 %vm2717_vm3, %v2715_v12  ;;  %v2085_v8 = vld [vmem:[%s3734_s4 + $0x130] sm:$0xff]  ;;  %v2027_v10 = vld [vmem:[%s3736_s0 + $0xc8] sm:$0xff]  ;;  %v2048_v14 = vld [vmem:[%s3736_s0 + $0xf8] sm:$0xff] }
  0x18   :  { %2284 = vmatmul.mubr.msk.f32.gmra.mrb[6].mxu0 %vm44_vm4, %v40_v28  ;;  %2304 = vmatmul.mubr.msk.f32.vlgmr.msra.gmra.mrb[6].mxu1 %vm44_vm4, %v1979_v29  ;;  %v2127_v15 = vld [vmem:[%s3734_s4 + $0x190] sm:$0xff]  ;;  %v2126_v16 = vld [vmem:[%s3734_s4 + $0x188] sm:$0xff]  ;;  %v2049_v18 = vld [vmem:[%s3736_s0 + $0x100] sm:$0xff] }
  0x19   :  { %2306 = vmatprep.mubr.msk.f32.mxu1 %vm2633_vm1, %v3743_v11  ;;  %2332 = vmatprep.mubr.msk.f32.mxu0 %vm2633_vm1, %v3743_v11  ;;  %v2028_v17 = vld [vmem:[%s3736_s0 + $0xd0] sm:$0xff]  ;;  %v2000_v19 = vld [vmem:[%s3734_s4 + $0x68] sm:$0x3]  ;;  %v2029_v21 = vld [vmem:[%s3736_s0 + $0xd8] sm:$0x3] }
  0x1a   :  { %613 = vperm.xlu1 %2626, %v2019_v30   ;;  %608 = vperm.xlu0 %2625, %v2018_v31   ;;  %v202_v20 = vld [vmem:[%s3734_s4 + $0x30] sm:$0x3]  ;;  %v2050_v22 = vld [vmem:[%s3736_s0 + $0x108] sm:$0xff]  ;;  %v2064_v24 = vld [vmem:[%s3734_s4 + $0x100] sm:$0xff] }
  0x1b   :  { %2565 = vmatprep.subr.bf16.mxu1 %v2632_v6  ;;  %2572 = vmatprep.subr.bf16.mxu0 %v2632_v6  ;;  %v2065_v23 = vld [vmem:[%s3734_s4 + $0x108] sm:$0xff]  ;;  %v2051_v25 = vld [vmem:[%s3736_s0 + $0x110] sm:$0x3]  ;;  %v2067_v26 = vld [vmem:[%s3736_s0 + $0x118] sm:$0xff] }
  0x1c   :  { %2307 = vmatmul.mubr.msk.f32.gmra.mrb[8].mxu1 %vm44_vm4, %v1980_v32  ;;  %2333 = vmatmul.mubr.msk.f32.vlgmr.msra.gmra.mrb[8].mxu0 %vm44_vm4, %v2001_v33  ;;  %v2107_v27 = vld [vmem:[%s3734_s4 + $0x168] sm:$0xff]  ;;  %v2106_v28 = vld [vmem:[%s3734_s4 + $0x160] sm:$0xff]  ;;  %v2089_v30 = vld [vmem:[%s3736_s0 + $0x150] sm:$0xff] }
  0x1d   :  { %2309 = vmatprep.mubr.msk.f32.mxu1 %vm2633_vm1, %v3743_v11  ;;  %2335 = vmatprep.mubr.msk.f32.mxu0 %vm2633_vm1, %v3743_v11  ;;  %v2068_v29 = vld [vmem:[%s3736_s0 + $0x120] sm:$0xff]  ;;  %v2149_v31 = vld [vmem:[%s3734_s4 + $0x1c8] sm:$0xff]  ;;  %v2109_v13 = vld [vmem:[%s3734_s4 + $0x178] sm:$0xff] }
  0x1e   :  { %1003 = vperm.xlu1 %2626, %v2061_v34   ;;  %998 = vperm.xlu0 %2625, %v2060_v35   ;;  %v2148_v32 = vld [vmem:[%s3734_s4 + $0x1c0] sm:$0xff]  ;;  %v2069_v33 = vld [vmem:[%s3736_s0 + $0x128] sm:$0xff]  ;;  %v2090_v34 = vld [vmem:[%s3736_s0 + $0x158] sm:$0xff] }
  0x1f   :  { %2567 = vmatpush3.bf16.msra.mxu1 %v2698_v7  ;;  %2574 = vmatpush3.bf16.msra.mxu0 %v2698_v7  ;;  %v2086_v35 = vld [vmem:[%s3734_s4 + $0x138] sm:$0xff] }
  0x20   :  { %2310 = vmatmul.mubr.msk.f32.gmra.mrb[10].mxu1 %vm44_vm4, %v1981_v36  ;;  %2336 = vmatmul.mubr.msk.f32.gmra.mrb[10].mxu0 %vm44_vm4, %v2002_v37  ;;  %v2022_v36 = vld [vmem:[%s3734_s4 + $0xa0] sm:$0x3]  ;;  %v2070_v37 = vld [vmem:[%s3736_s0 + $0x130] sm:$0xff] }
  0x21   :  { %2312 = vmatprep.mubr.msk.f32.mxu1 %vm2633_vm1, %v3743_v11  ;;  %2338 = vmatprep.mubr.msk.f32.mxu0 %vm2633_vm1, %v3743_v11 }
  0x22   :  { %230 = vperm.xlu1 %2626, %v201_v38   ;;  %225 = vperm.xlu0 %2625, %v200_v39   ;;  %v2128_v38 = vld [vmem:[%s3734_s4 + $0x198] sm:$0xff]  ;;  %v2087_v39 = vld [vmem:[%s3734_s4 + $0x140] sm:$0xff] }
  0x23   :  { %2568 = vmatprep.subr.bf16.mxu1 %v2632_v6  ;;  %2575 = vmatprep.subr.bf16.mxu0 %v2632_v6 }
  0x24   :  { %2313 = vmatmul.mubr.msk.f32.gmra.mrb[12].mxu1 %vm44_vm4, %v1982_v40  ;;  %2339 = vmatmul.mubr.msk.f32.gmra.mrb[12].mxu0 %vm44_vm4, %v2003_v41  ;;  %v2071_v40 = vld [vmem:[%s3736_s0 + $0x138] sm:$0xff]  ;;  %v2092_v41 = vld [vmem:[%s3736_s0 + $0x168] sm:$0xff] }
  0x25   :  { %2315 = vmatprep.mubr.msk.f32.mxu1 %vm2633_vm1, %v3743_v11  ;;  %2341 = vmatprep.mubr.msk.f32.mxu0 %vm2633_vm1, %v3743_v11 }
  0x26   :  { %423 = vperm.xlu1 %2626, %v1999_v42   ;;  %418 = vperm.xlu0 %2625, %v1998_v43   ;;  %v2044_v42 = vld [vmem:[%s3734_s4 + $0xd8] sm:$0x3]  ;;  %v2129_v43 = vld [vmem:[%s3734_s4 + $0x1a0] sm:$0xff] }
  0x27   :  { %2571 = vmatpush3.bf16.msk.msra.mxu1 %vm2717_vm3, %v2715_v12  ;;  %2578 = vmatpush3.bf16.msk.msra.mxu0 %vm2717_vm3, %v2715_v12 }
  0x28   :  { %2316 = vmatmul.mubr.msk.f32.gmra.mrb[14].mxu1 %vm44_vm4, %v1983_v44  ;;  %2342 = vmatmul.mubr.msk.f32.gmra.mrb[14].mxu0 %vm44_vm4, %v2004_v45  ;;  %v2072_v44 = vld [vmem:[%s3736_s0 + $0x140] sm:$0xff]  ;;  %v2108_v45 = vld [vmem:[%s3734_s4 + $0x170] sm:$0xff] }
  0x29   :  { %2318 = vmatprep.mubr.msk.f32.mxu1 %vm2633_vm1, %v3743_v11  ;;  %2344 = vmatprep.mubr.msk.f32.mxu0 %vm2633_vm1, %v3743_v11 }
  0x2a   :  { %813 = vperm.xlu1 %2626, %v2041_v46   ;;  %808 = vperm.xlu0 %2625, %v2040_v47   ;;  %v2073_v46 = vld [vmem:[%s3736_s0 + $0x148] sm:$0x3]  ;;  %v2094_v47 = vld [vmem:[%s3736_s0 + $0x178] sm:$0xff] }
  0x2b   :  { %2579 = vmatprep.subr.bf16.mxu1 %v2632_v6  ;;  %2586 = vmatprep.subr.bf16.mxu0 %v2632_v6 }
  0x2c   :  { %2319 = vmatmul.mubr.msk.f32.gmra.mrb[16].mxu1 %vm44_vm4, %v1984_v48  ;;  %2345 = vmatmul.mubr.msk.f32.gmra.mrb[16].mxu0 %vm44_vm4, %v2005_v49  ;;  %v2151_v48 = vld [vmem:[%s3734_s4 + $0x1d8] sm:$0xff]  ;;  %v2150_v49 = vld [vmem:[%s3734_s4 + $0x1d0] sm:$0xff] }
  0x2d   :  { %2321 = vmatprep.mubr.msk.f32.mxu1 %vm2633_vm1, %v3743_v11  ;;  %2347 = vmatprep.mubr.msk.f32.mxu0 %vm2633_vm1, %v3743_v11 }
  0x2e   :  { %1203 = vperm.xlu1 %2626, %v2083_v50   ;;  %1198 = vperm.xlu0 %2625, %v2082_v51   ;;  %v2095_v50 = vld [vmem:[%s3736_s0 + $0x180] sm:$0x3]  ;;  %v2111_v51 = vld [vmem:[%s3736_s0 + $0x188] sm:$0xff] }
  0x30   :  { %2322 = vmatmul.mubr.msk.f32.gmra.mrb[18].mxu1 %vm44_vm4, %v1985_v52  ;;  %2348 = vmatmul.mubr.msk.f32.gmra.mrb[18].mxu0 %vm44_vm4, %v2006_v53  ;;  %v2130_v52 = vld [vmem:[%s3734_s4 + $0x1a8] sm:$0xff]  ;;  %v2066_v53 = vld [vmem:[%s3734_s4 + $0x110] sm:$0x3] }
  0x31   :  { %2350 = vmatprep.mubr.msk.f32.mxu0 %vm2633_vm1, %v3743_v11  ;;  %2361 = vmatprep.mubr.msk.f32.mxu1 %vm2633_vm1, %v3743_v11 }
  0x32   :  { %623 = vperm.xlu1 %2626, %v2021_v54   ;;  %618 = vperm.xlu0 %2625, %v2020_v55   ;;  %v2112_v54 = vld [vmem:[%s3736_s0 + $0x190] sm:$0xff]  ;;  %v2133_v55 = vld [vmem:[%s3736_s0 + $0x1c0] sm:$0xff] }
  0x34   :  { %2351 = vmatmul.mubr.msk.f32.gmra.mrb[20].mxu0 %vm44_vm4, %v2007_v56  ;;  %2362 = vmatmul.mubr.msk.f32.vlgmr.msra.gmra.mrb[20].mxu1 %vm44_vm4, %v2023_v57  ;;  %v2088_v56 = vld [vmem:[%s3734_s4 + $0x148] sm:$0x3]  ;;  %v2131_v57 = vld [vmem:[%s3734_s4 + $0x1b0] sm:$0xff] }
  0x35   :  { %2364 = vmatprep.mubr.msk.f32.mxu1 %vm2633_vm1, %v3743_v11  ;;  %2390 = vmatprep.mubr.msk.f32.mxu0 %vm2633_vm1, %v3743_v11 }
  0x36   :  { %1013 = vperm.xlu1 %2626, %v2063_v58   ;;  %1008 = vperm.xlu0 %2625, %v2062_v59   ;;  %v2113_v58 = vld [vmem:[%s3736_s0 + $0x198] sm:$0xff]  ;;  %v2134_v59 = vld [vmem:[%s3736_s0 + $0x1c8] sm:$0xff] }
  0x37   :  { %2581 = vmatpush3.bf16.msra.mxu1 %v2698_v7 }
  0x38   :  { %2365 = vmatmul.mubr.msk.f32.gmra.mrb[22].mxu1 %vm44_vm4, %v2024_v60  ;;  %2391 = vmatmul.mubr.msk.f32.vlgmr.msra.gmra.mrb[22].mxu0 %vm44_vm4, %v2045_v61  ;;  %v2153_v60 = vld [vmem:[%s3734_s4 + $0x1e8] sm:$0xff]  ;;  %v2152_v61 = vld [vmem:[%s3734_s4 + $0x1e0] sm:$0xff] }
  0x39   :  { %2367 = vmatprep.mubr.msk.f32.mxu1 %vm2633_vm1, %v3743_v11  ;;  %2393 = vmatprep.mubr.msk.f32.mxu0 %vm2633_vm1, %v3743_v11 }
  0x3a   :  { %1403 = vperm.xlu1 %2626, %v2105_v62   ;;  %1398 = vperm.xlu0 %2625, %v2104_v63   ;;  %v2114_v62 = vld [vmem:[%s3736_s0 + $0x1a0] sm:$0xff]  ;;  %v2135_v63 = vld [vmem:[%s3736_s0 + $0x1d0] sm:$0xff] }
  0x3b   :  { %2588 = vmatpush3.bf16.msra.mxu0 %v2698_v7  ;;  %2582 = vmatprep.subr.bf16.mxu1 %v2632_v6 }
  0x3c   :  { %2368 = vmatmul.mubr.msk.f32.gmra.mrb[24].mxu1 %vm44_vm4, %v2025_v0  ;;  %2394 = vmatmul.mubr.msk.f32.gmra.mrb[24].mxu0 %vm44_vm4, %v2046_v1  ;;  %v2132_v0 = vld [vmem:[%s3734_s4 + $0x1b8] sm:$0x3]  ;;  %v2110_v1 = vld [vmem:[%s3734_s4 + $0x180] sm:$0x3] }
  0x3d   :  { %2370 = vmatprep.mubr.msk.f32.mxu1 %vm2633_vm1, %v3743_v11  ;;  %2396 = vmatprep.mubr.msk.f32.mxu0 %vm2633_vm1, %v3743_v11 }
  0x3e   :  { %823 = vperm.xlu1 %2626, %v2043_v2   ;;  %818 = vperm.xlu0 %2625, %v2042_v3   ;;  %v2115_v2 = vld [vmem:[%s3736_s0 + $0x1a8] sm:$0xff]  ;;  %v2136_v3 = vld [vmem:[%s3736_s0 + $0x1d8] sm:$0xff] }
  0x3f   :  { %2585 = vmatpush3.bf16.msk.msra.mxu1 %vm2717_vm3, %v2715_v12  ;;  %2589 = vmatprep.subr.bf16.mxu0 %v2632_v6 }
  0x40   :  { %2371 = vmatmul.mubr.msk.f32.gmra.mrb[26].mxu1 %vm44_vm4, %v2026_v4  ;;  %2397 = vmatmul.mubr.msk.f32.gmra.mrb[26].mxu0 %vm44_vm4, %v2047_v5  ;;  %v2154_v4 = vld [vmem:[%s3734_s4 + $0x1f0] sm:$0x3] }
  0x41   :  { %2373 = vmatprep.mubr.msk.f32.mxu1 %vm2633_vm1, %v3743_v11  ;;  %2399 = vmatprep.mubr.msk.f32.mxu0 %vm2633_vm1, %v3743_v11  ;;  %v2116_v5 = vld [vmem:[%s3736_s0 + $0x1b0] sm:$0xff] }
  0x42   :  { %1213 = vperm.xlu1 %2626, %v2085_v8   ;;  %1208 = vperm.xlu0 %2625, %v2084_v9   ;;  %v2137_v8 = vld [vmem:[%s3736_s0 + $0x1e0] sm:$0xff] }
  0x43   :  { %2592 = vmatpush3.bf16.msk.msra.mxu0 %vm2717_vm3, %v2715_v12  ;;  %2593 = vmatprep.subr.bf16.mxu1 %v2632_v6 }
  0x44   :  { %2374 = vmatmul.mubr.msk.f32.gmra.mrb[28].mxu1 %vm44_vm4, %v2027_v10  ;;  %2400 = vmatmul.mubr.msk.f32.gmra.mrb[28].mxu0 %vm44_vm4, %v2048_v14  ;;  %v2117_v14 = vld [vmem:[%s3736_s0 + $0x1b8] sm:$0x3] }
  0x45   :  { %2376 = vmatprep.mubr.msk.f32.mxu1 %vm2633_vm1, %v3743_v11  ;;  %2402 = vmatprep.mubr.msk.f32.mxu0 %vm2633_vm1, %v3743_v11 }
  0x46   :  { %1603 = vperm.xlu1 %2626, %v2127_v15   ;;  %1598 = vperm.xlu0 %2625, %v2126_v16   ;;  %v2138_v15 = vld [vmem:[%s3736_s0 + $0x1e8] sm:$0xff] }
  0x47   :  { %2600 = vmatprep.subr.bf16.mxu0 %v2632_v6 }
  0x48   :  { %2377 = vmatmul.mubr.msk.f32.gmra.mrb[30].mxu1 %vm44_vm4, %v2028_v17  ;;  %2403 = vmatmul.mubr.msk.f32.gmra.mrb[30].mxu0 %vm44_vm4, %v2049_v18  ;;  %v2139_v18 = vld [vmem:[%s3736_s0 + $0x1f0] sm:$0x3] }
  0x49   :  { %2379 = vmatprep.mubr.msk.f32.mxu1 %vm2633_vm1, %v3743_v11  ;;  %2405 = vmatprep.mubr.msk.f32.mxu0 %vm2633_vm1, %v3743_v11 }
  0x4a   :  { %428 = vperm.xlu1 %2626, %v2000_v19   ;;  %235 = vperm.xlu0 %2625, %v202_v20  }
  0x4c   :  { %2380 = vmatmul.mubr.msk.f32.gmra.mrb[32].mxu1 %vm44_vm4, %v2029_v21  ;;  %2406 = vmatmul.mubr.msk.f32.gmra.mrb[32].mxu0 %vm44_vm4, %v2050_v22 }
  0x4d   :  { %2408 = vmatprep.mubr.msk.f32.mxu0 %vm2633_vm1, %v3743_v11  ;;  %2419 = vmatprep.mubr.msk.f32.mxu1 %vm2633_vm1, %v3743_v11 }
  0x4e   :  { %1023 = vperm.xlu1 %2626, %v2065_v23   ;;  %1018 = vperm.xlu0 %2625, %v2064_v24  }
  0x50   :  { %2409 = vmatmul.mubr.msk.f32.gmra.mrb[34].mxu0 %vm44_vm4, %v2051_v25  ;;  %2420 = vmatmul.mubr.msk.f32.vlgmr.msra.gmra.mrb[34].mxu1 %vm44_vm4, %v2067_v26 }
  0x51   :  { %2422 = vmatprep.mubr.msk.f32.mxu1 %vm2633_vm1, %v3743_v11  ;;  %2448 = vmatprep.mubr.msk.f32.mxu0 %vm2633_vm1, %v3743_v11 }
  0x52   :  { %1413 = vperm.xlu1 %2626, %v2107_v27   ;;  %1408 = vperm.xlu0 %2625, %v2106_v28  }
  0x53   :  { %2595 = vmatpush3.bf16.msra.mxu1 %v2698_v7 }
  0x54   :  { %2423 = vmatmul.mubr.msk.f32.gmra.mrb[36].mxu1 %vm44_vm4, %v2068_v29  ;;  %2449 = vmatmul.mubr.msk.f32.vlgmr.msra.gmra.mrb[36].mxu0 %vm44_vm4, %v2089_v30 }
  0x55   :  { %2425 = vmatprep.mubr.msk.f32.mxu1 %vm2633_vm1, %v3743_v11  ;;  %2451 = vmatprep.mubr.msk.f32.mxu0 %vm2633_vm1, %v3743_v11 }
  0x56   :  { %1803 = vperm.xlu1 %2626, %v2149_v31   ;;  %1798 = vperm.xlu0 %2625, %v2148_v32  }
  0x57   :  { %2602 = vmatpush3.bf16.msra.mxu0 %v2698_v7  ;;  %2596 = vmatprep.subr.bf16.mxu1 %v2632_v6  ;;  %v2091_v7 = vld [vmem:[%s3736_s0 + $0x160] sm:$0xff] }
  0x58   :  { %2426 = vmatmul.mubr.msk.f32.gmra.mrb[38].mxu1 %vm44_vm4, %v2069_v33  ;;  %2452 = vmatmul.mubr.msk.f32.gmra.mrb[38].mxu0 %vm44_vm4, %v2090_v34 }
  0x59   :  { %2428 = vmatprep.mubr.msk.f32.mxu1 %vm2633_vm1, %v3743_v11  ;;  %2454 = vmatprep.mubr.msk.f32.mxu0 %vm2633_vm1, %v3743_v11 }
  0x5a   :  { %1218 = vperm.xlu1 %2626, %v2086_v35   ;;  %628 = vperm.xlu0 %2625, %v2022_v36  }
  0x5b   :  { %2599 = vmatpush3.bf16.msk.msra.mxu1 %vm2717_vm3, %v2715_v12  ;;  %2603 = vmatprep.subr.bf16.mxu0 %v2632_v6 }
  0x5c   :  { %2429 = vmatmul.mubr.msk.f32.gmra.mrb[40].mxu1 %vm44_vm4, %v2070_v37  ;;  %2455 = vmatmul.mubr.msk.f32.gmra.mrb[40].mxu0 %vm44_vm4, %v2091_v7 }
  0x5d   :  { %2431 = vmatprep.mubr.msk.f32.mxu1 %vm2633_vm1, %v3743_v11  ;;  %2457 = vmatprep.mubr.msk.f32.mxu0 %vm2633_vm1, %v3743_v11 }
  0x5e   :  { %1608 = vperm.xlu1 %2626, %v2128_v38   ;;  %1223 = vperm.xlu0 %2625, %v2087_v39  }
  0x5f   :  { %2606 = vmatpush3.bf16.msk.msra.mxu0 %vm2717_vm3, %v2715_v12  ;;  %2607 = vmatprep.subr.bf16.mxu1 %v2632_v6  ;;  %v2093_v12 = vld [vmem:[%s3736_s0 + $0x170] sm:$0xff] }
  0x60   :  { %2432 = vmatmul.mubr.msk.f32.gmra.mrb[42].mxu1 %vm44_vm4, %v2071_v40  ;;  %2458 = vmatmul.mubr.msk.f32.gmra.mrb[42].mxu0 %vm44_vm4, %v2092_v41 }
  0x61   :  { %2434 = vmatprep.mubr.msk.f32.mxu1 %vm2633_vm1, %v3743_v11  ;;  %2460 = vmatprep.mubr.msk.f32.mxu0 %vm2633_vm1, %v3743_v11 }
  0x62   :  { %828 = vperm.xlu1 %2626, %v2044_v42   ;;  %1613 = vperm.xlu0 %2625, %v2129_v43  }
  0x64   :  { %2435 = vmatmul.mubr.msk.f32.gmra.mrb[44].mxu1 %vm44_vm4, %v2072_v44  ;;  %2461 = vmatmul.mubr.msk.f32.gmra.mrb[44].mxu0 %vm44_vm4, %v2093_v12 }
  0x65   :  { %2437 = vmatprep.mubr.msk.f32.mxu1 %vm2633_vm1, %v3743_v11  ;;  %2463 = vmatprep.mubr.msk.f32.mxu0 %vm2633_vm1, %v3743_v11 }
  0x66   :  { %1423 = vperm.xlu1 %2626, %v2109_v13   ;;  %1418 = vperm.xlu0 %2625, %v2108_v45  }
  0x68   :  { %2438 = vmatmul.mubr.msk.f32.gmra.mrb[46].mxu1 %vm44_vm4, %v2073_v46  ;;  %2464 = vmatmul.mubr.msk.f32.gmra.mrb[46].mxu0 %vm44_vm4, %v2094_v47 }
  0x69   :  { %2466 = vmatprep.mubr.msk.f32.mxu0 %vm2633_vm1, %v3743_v11  ;;  %2477 = vmatprep.mubr.msk.f32.mxu1 %vm2633_vm1, %v3743_v11 }
  0x6a   :  { %1813 = vperm.xlu1 %2626, %v2151_v48   ;;  %1808 = vperm.xlu0 %2625, %v2150_v49   ;;  %v3404_v48 = vld [vmem:[%s3737_s2] ss:$0 sm:$0xff] }
  0x6c   :  { %2467 = vmatmul.mubr.msk.f32.gmra.mrb[48].mxu0 %vm44_vm4, %v2095_v50  ;;  %2478 = vmatmul.mubr.msk.f32.vlgmr.msra.gmra.mrb[48].mxu1 %vm44_vm4, %v2111_v51 }
  0x6d   :  { %2480 = vmatprep.mubr.msk.f32.mxu1 %vm2633_vm1, %v3743_v11  ;;  %2506 = vmatprep.mubr.msk.f32.mxu0 %vm2633_vm1, %v3743_v11 }
  0x6e   :  { %1618 = vperm.xlu1 %2626, %v2130_v52   ;;  %1028 = vperm.xlu0 %2625, %v2066_v53  }
  0x70   :  { %2481 = vmatmul.mubr.msk.f32.gmra.mrb[50].mxu1 %vm44_vm4, %v2112_v54  ;;  %2507 = vmatmul.mubr.msk.f32.vlgmr.msra.gmra.mrb[50].mxu0 %vm44_vm4, %v2133_v55  ;;  %v3410_v54 = vld [vmem:[%s3738_s3] ss:$0 sm:$0xff] }
  0x71   :  { %2483 = vmatprep.mubr.msk.f32.mxu1 %vm2633_vm1, %v3743_v11  ;;  %2509 = vmatprep.mubr.msk.f32.mxu0 %vm2633_vm1, %v3743_v11 }
  0x72   :  { %1228 = vperm.xlu1 %2626, %v2088_v56   ;;  %1623 = vperm.xlu0 %2625, %v2131_v57  }
  0x74   :  { %2484 = vmatmul.mubr.msk.f32.gmra.mrb[52].mxu1 %vm44_vm4, %v2113_v58  ;;  %2510 = vmatmul.mubr.msk.f32.gmra.mrb[52].mxu0 %vm44_vm4, %v2134_v59 }
  0x75   :  { %2486 = vmatprep.mubr.msk.f32.mxu1 %vm2633_vm1, %v3743_v11  ;;  %2512 = vmatprep.mubr.msk.f32.mxu0 %vm2633_vm1, %v3743_v11 }
  0x76   :  { %1823 = vperm.xlu1 %2626, %v2153_v60   ;;  %1818 = vperm.xlu0 %2625, %v2152_v61  }
  0x78   :  { %2487 = vmatmul.mubr.msk.f32.gmra.mrb[54].mxu1 %vm44_vm4, %v2114_v62  ;;  %2513 = vmatmul.mubr.msk.f32.gmra.mrb[54].mxu0 %vm44_vm4, %v2135_v63 }
  0x79   :  { %2489 = vmatprep.mubr.msk.f32.mxu1 %vm2633_vm1, %v3743_v11  ;;  %2515 = vmatprep.mubr.msk.f32.mxu0 %vm2633_vm1, %v3743_v11 }
  0x7a   :  { %1628 = vperm.xlu1 %2626, %v2132_v0   ;;  %1428 = vperm.xlu0 %2625, %v2110_v1  }
  0x7c   :  { %2490 = vmatmul.mubr.msk.f32.gmra.mrb[56].mxu1 %vm44_vm4, %v2115_v2  ;;  %2516 = vmatmul.mubr.msk.f32.gmra.mrb[56].mxu0 %vm44_vm4, %v2136_v3 }
  0x7d   :  { %2492 = vmatprep.mubr.msk.f32.mxu1 %vm2633_vm1, %v3743_v11  ;;  %2518 = vmatprep.mubr.msk.f32.mxu0 %vm2633_vm1, %v3743_v11 }
  0x7e   :  { %1828 = vperm.xlu0 %2625, %v2154_v4  }
  0x80   :  { %2493 = vmatmul.mubr.msk.f32.gmra.mrb[58].mxu1 %vm44_vm4, %v2116_v5  ;;  %2519 = vmatmul.mubr.msk.f32.gmra.mrb[58].mxu0 %vm44_vm4, %v2137_v8 }
  0x81   :  { %v3311_v9 = vpop.permute.xlu1 %398  ;;  %v3313_v10 = vpop.permute.xlu0 %205  ;;  %2495 = vmatprep.mubr.msk.f32.mxu1 %vm2633_vm1, %v3743_v11  ;;  %2521 = vmatprep.mubr.msk.f32.mxu0 %vm2633_vm1, %v3743_v11 }
  0x84   :  { %2496 = vmatmul.mubr.msk.f32.gmra.mrb[60].mxu1 %vm44_vm4, %v2117_v14  ;;  %2522 = vmatmul.mubr.msk.f32.gmra.mrb[60].mxu0 %vm44_vm4, %v2138_v15 }
  0x85   :  { %v3327_v16 = vpop.permute.xlu1 %403  ;;  %v3329_v17 = vpop.permute.xlu0 %210  ;;  %2524 = vmatprep.mubr.msk.f32.mxu0 %vm2633_vm1, %v3743_v11  ;;  %2541 = vmatprep.mubr.msk.f32.mxu1 %vm2633_vm1, %v3743_v11 }
  0x88   :  { %2525 = vmatmul.mubr.msk.f32.gmra.mrb[62].mxu0 %vm44_vm4, %v2139_v18 }
  0x89   :  { %v3339_v19 = vpop.permute.xlu0 %598  ;;  %v3341_v20 = vpop.permute.xlu1 %603 }
  0x8d   :  { %v3343_v21 = vpop.permute.xlu0 %215  ;;  %v3345_v22 = vpop.permute.xlu1 %220 }
  0x91   :  { %v3347_v23 = vpop.permute.xlu0 %408  ;;  %v3351_v25 = vpop.permute.xlu1 %413 }
  0x95   :  { %v3349_v24 = vpop.permute.xlu0 %798  ;;  %v3355_v27 = vpop.permute.xlu1 %803 }
  0x99   :  { %v3353_v26 = vpop.permute.xlu0 %608  ;;  %v3359_v29 = vpop.permute.xlu1 %613 }
  0x9d   :  { %v3357_v28 = vpop.permute.xlu0 %998  ;;  %v3361_v31 = vpop.permute.xlu1 %1003 }
  0xa1   :  { %v226_v30 = vpop.permute.xlu0 %225  ;;  %v3365_v33 = vpop.permute.xlu1 %230 }
  0xa5   :  { %v3363_v32 = vpop.permute.xlu0 %418  ;;  %v3369_v35 = vpop.permute.xlu1 %423 }
  0xa9   :  { %v3367_v34 = vpop.permute.xlu0 %808  ;;  %v3373_v37 = vpop.permute.xlu1 %813 }
  0xad   :  { %v3371_v36 = vpop.permute.xlu0 %1198  ;;  %v3377_v38 = vpop.permute.xlu1 %1203 }
  0xb1   :  { %v3375_v7 = vpop.permute.xlu0 %618  ;;  %v3381_v40 = vpop.permute.xlu1 %623 }
  0xb5   :  { %v3379_v39 = vpop.permute.xlu0 %1008  ;;  %v3385_v42 = vpop.permute.xlu1 %1013 }
  0xb9   :  { %v3383_v41 = vpop.permute.xlu0 %1398  ;;  %v3389_v44 = vpop.permute.xlu1 %1403 }
  0xbd   :  { %v3387_v43 = vpop.permute.xlu0 %818  ;;  %v3393_v13 = vpop.permute.xlu1 %823 }
  0xc1   :  { %v3391_v12 = vpop.permute.xlu0 %1208  ;;  %v3397_v46 = vpop.permute.xlu1 %1213 }
  0xc5   :  { %v3395_v45 = vpop.permute.xlu0 %1598  ;;  %v3417_v61 = vpop.permute.xlu1 %1603 }
  0xc9   :  { %v3399_v47 = vpop.permute.xlu0 %235 }
  0xcd   :  { %v3419_v62 = vpop.permute.xlu0 %1018 }
  0xdf   :  { %v136_v49 = vpop.f32.mrb[0].mxu0  ;;  %v156_v50 = vpop.f32.mrb[0].mxu1 }
  0xe0   :  { %v2276_v51 = vpop.f32.mrb[1].mxu0  ;;  %v180_v52 = vmul.f32 %v3404_v48, %v156_v50  ;;  %v2288_v53 = vpop.f32.mrb[1].mxu1  ;;  %v176_v1 = vmul.f32 %v3404_v48, %v136_v49 }
  0xe1   :  { %v3427_v50 = vpop.permute.xlu1 %428  ;;  %v3429_v51 = vpop.permute.xlu0 %1408 }
  0xe2   :  { %v193_v55 = vadd.f32 %v3410_v54, %v180_v52  ;;  %v189_v14 = vadd.f32 %v3410_v54, %v176_v1 }
  0xe3   :  { %v141_v56 = vpop.f32.mrb[2].mxu0  ;;  %v3413_v57 = vpop.f32.mrb[2].mxu1 }
  0xe4   :  { %v3415_v58 = vadd.f32 %v226_v30, %v193_v55  ;;  %v2279_v59 = vpop.f32.mrb[3].mxu0  ;;  %v2291_v60 = vpop.f32.mrb[3].mxu1  ;;  %v177_v4 = vmul.f32 %v3404_v48, %v141_v56 }
  0xe5   :  { %v238_v59 = vadd.f32 %v3313_v10, %v189_v14 }
  0xe6   :  { %v190_v49 = vadd.f32 %v3410_v54, %v177_v4 }
  0xe7   :  { %v146_v63 = vpop.f32.mrb[4].mxu0  ;;  %v3421_v0 = vpop.f32.mrb[4].mxu1 }
  0xe8   :  { %v2282_v2 = vpop.f32.mrb[5].mxu0  ;;  %v2294_v3 = vpop.f32.mrb[5].mxu1  ;;  %v178_v53 = vmul.f32 %v3404_v48, %v146_v63  ;;  %v239_v4 = vadd.f32 %v3329_v17, %v190_v49 }
  0xea   :  { %v191_v63 = vadd.f32 %v3410_v54, %v178_v53 }
  0xeb   :  { %v151_v5 = vpop.f32.mrb[6].mxu0  ;;  %v340_v8 = vpop.f32.mrb[6].mxu1 }
  0xec   :  { %v374_v15 = vmul.f32 %v3404_v48, %v340_v8  ;;  %v2285_v18 = vpop.f32.mrb[7].mxu0  ;;  %v2305_v30 = vpop.f32.mrb[7].mxu1  ;;  %v179_v11 = vmul.f32 %v3404_v48, %v151_v5 }
  0xee   :  { %v381_v52 = vadd.f32 %v3410_v54, %v374_v15 }
  0xef   :  { %v345_v55 = vpop.f32.mrb[8].mxu1  ;;  %v540_v56 = vpop.f32.mrb[8].mxu0 }
  0xf0   :  { %v431_v60 = vadd.f32 %v3311_v9, %v381_v52  ;;  %v375_v1 = vmul.f32 %v3404_v48, %v345_v55  ;;  %v574_v2 = vmul.f32 %v3404_v48, %v540_v56  ;;  %v2334_v3 = vpop.f32.mrb[9].mxu0  ;;  %v2308_v8 = vpop.f32.mrb[9].mxu1 }
  0xf2   :  { %v438_v18 = vmax.f32 %v238_v59, %v431_v60  ;;  %v382_v30 = vadd.f32 %v3410_v54, %v375_v1  ;;  %v581_v15 = vadd.f32 %v3410_v54, %v574_v2  ;;  %v3447_v1 = vpop.permute.xlu1 %1023  ;;  %v3449_v2 = vpop.permute.xlu0 %1798 }
  0xf3   :  { %v350_v10 = vpop.f32.mrb[10].mxu1  ;;  %v545_v14 = vpop.f32.mrb[10].mxu0 }
  0xf4   :  { %v432_v9 = vadd.f32 %v3327_v16, %v382_v30  ;;  %v631_v52 = vadd.f32 %v3339_v19, %v581_v15  ;;  %v376_v55 = vmul.f32 %v3404_v48, %v350_v10  ;;  %v575_v56 = vmul.f32 %v3404_v48, %v545_v14  ;;  %v2337_v59 = vpop.f32.mrb[11].mxu0  ;;  %v2311_v60 = vpop.f32.mrb[11].mxu1 }
  0xf5   :  { %v240_v16 = vadd.f32 %v3343_v21, %v191_v63  ;;  %v192_v19 = vadd.f32 %v3410_v54, %v179_v11  ;;  %v181_v11 = vmul.f32 %v3404_v48, %v3413_v57 }
  0xf6   :  { %v439_v17 = vmax.f32 %v239_v4, %v432_v9  ;;  %v3451_v49 = vmax.f32 %v438_v18, %v631_v52  ;;  %v383_v5 = vadd.f32 %v3410_v54, %v376_v55  ;;  %v582_v53 = vadd.f32 %v3410_v54, %v575_v56 }
  0xf7   :  { %v355_v3 = vpop.f32.mrb[12].mxu1  ;;  %v550_v8 = vpop.f32.mrb[12].mxu0 }
  0xf8   :  { %v433_v30 = vadd.f32 %v3347_v23, %v383_v5  ;;  %v632_v15 = vadd.f32 %v3341_v20, %v582_v53  ;;  %v377_v10 = vmul.f32 %v3404_v48, %v355_v3  ;;  %v576_v4 = vmul.f32 %v3404_v48, %v550_v8  ;;  %v2340_v18 = vpop.f32.mrb[13].mxu0  ;;  %v2314_v14 = vpop.f32.mrb[13].mxu1 }
  0xf9   :  { %v241_v23 = vadd.f32 %v3345_v22, %v192_v19  ;;  %v629_v3 = vpop.permute.xlu0 %628 }
  0xfa   :  { %v440_v9 = vmax.f32 %v240_v16, %v433_v30  ;;  %v3461_v52 = vmax.f32 %v439_v17, %v632_v15  ;;  %v384_v55 = vadd.f32 %v3410_v54, %v377_v10  ;;  %v583_v21 = vadd.f32 %v3410_v54, %v576_v4  ;;  %v3472_v16 = vpop.permute.xlu1 %1413 }
  0xfb   :  { %v360_v63 = vpop.f32.mrb[14].mxu1  ;;  %v555_v20 = vpop.f32.mrb[14].mxu0 }
  0xfc   :  { %v434_v56 = vadd.f32 %v3351_v25, %v384_v55  ;;  %v633_v59 = vadd.f32 %v3353_v26, %v583_v21  ;;  %v378_v60 = vmul.f32 %v3404_v48, %v360_v63  ;;  %v577_v17 = vmul.f32 %v3404_v48, %v555_v20  ;;  %v2343_v5 = vpop.f32.mrb[15].mxu0  ;;  %v2317_v53 = vpop.f32.mrb[15].mxu1 }
  0xfd   :  { %v194_v25 = vadd.f32 %v3410_v54, %v181_v11  ;;  %v182_v26 = vmul.f32 %v3404_v48, %v3421_v0 }
  0xfe   :  { %v441_v8 = vmax.f32 %v241_v23, %v434_v56  ;;  %v3474_v30 = vmax.f32 %v440_v9, %v633_v59  ;;  %v385_v22 = vadd.f32 %v3410_v54, %v378_v60  ;;  %v584_v57 = vadd.f32 %v3410_v54, %v577_v17  ;;  %v3496_v53 = vpop.permute.xlu1 %1803 }
  0xff   :  { %v365_v19 = vpop.f32.mrb[16].mxu1  ;;  %v560_v15 = vpop.f32.mrb[16].mxu0  ;;  %v243_v63 = vadd.f32 %v3365_v33, %v194_v25 }
 0x100   :  { %v435_v10 = vadd.f32 %v3363_v32, %v385_v22  ;;  %v634_v4 = vadd.f32 %v3359_v29, %v584_v57  ;;  %v379_v18 = vmul.f32 %v3404_v48, %v365_v19  ;;  %v578_v14 = vmul.f32 %v3404_v48, %v560_v15  ;;  %v2346_v9 = vpop.f32.mrb[17].mxu0  ;;  %v2320_v55 = vpop.f32.mrb[17].mxu1 }
 0x101   :  { %v195_v32 = vadd.f32 %v3410_v54, %v182_v26 }
 0x102   :  { %v442_v21 = vmax.f32 %v3415_v58, %v435_v10  ;;  %v3486_v23 = vmax.f32 %v441_v8, %v634_v4  ;;  %v386_v11 = vadd.f32 %v3410_v54, %v379_v18  ;;  %v585_v0 = vadd.f32 %v3410_v54, %v578_v14  ;;  %v3498_v8 = vpop.permute.xlu0 %1223 }
 0x103   :  { %v370_v20 = vpop.f32.mrb[18].mxu1  ;;  %v565_v29 = vpop.f32.mrb[18].mxu0 }
 0x104   :  { %v436_v56 = vadd.f32 %v3369_v35, %v386_v11  ;;  %v635_v59 = vadd.f32 %v3375_v7, %v585_v0  ;;  %v380_v60 = vmul.f32 %v3404_v48, %v370_v20  ;;  %v579_v58 = vmul.f32 %v3404_v48, %v565_v29  ;;  %v2349_v17 = vpop.f32.mrb[19].mxu0  ;;  %v2323_v5 = vpop.f32.mrb[19].mxu1 }
 0x105   :  { %v244_v35 = vadd.f32 %v3399_v47, %v195_v32 }
 0x106   :  { %v443_v22 = vmax.f32 %v243_v63, %v436_v56  ;;  %v3500_v33 = vmax.f32 %v442_v21, %v635_v59  ;;  %v387_v57 = vadd.f32 %v3410_v54, %v380_v60  ;;  %v586_v25 = vadd.f32 %v3410_v54, %v579_v58  ;;  %v3516_v56 = vpop.permute.xlu1 %1218  ;;  %v3518_v59 = vpop.permute.xlu0 %1613 }
 0x107   :  { %v570_v7 = vpop.f32.mrb[20].mxu0  ;;  %v740_v26 = vpop.f32.mrb[20].mxu1 }
 0x108   :  { %v437_v19 = vadd.f32 %v3427_v50, %v387_v57  ;;  %v636_v15 = vadd.f32 %v3381_v40, %v586_v25  ;;  %v580_v10 = vmul.f32 %v3404_v48, %v570_v7  ;;  %v774_v4 = vmul.f32 %v3404_v48, %v740_v26  ;;  %v2352_v18 = vpop.f32.mrb[21].mxu0  ;;  %v2363_v14 = vpop.f32.mrb[21].mxu1 }
 0x10a   :  { %v444_v9 = vmax.f32 %v244_v35, %v437_v19  ;;  %v3509_v55 = vmax.f32 %v443_v22, %v636_v15  ;;  %v587_v21 = vadd.f32 %v3410_v54, %v580_v10  ;;  %v781_v11 = vadd.f32 %v3410_v54, %v774_v4 }
 0x10b   :  { %v745_v47 = vpop.f32.mrb[22].mxu1  ;;  %v940_v0 = vpop.f32.mrb[22].mxu0 }
 0x10c   :  { %v637_v63 = vadd.f32 %v629_v3, %v587_v21  ;;  %v831_v50 = vadd.f32 %v3349_v24, %v781_v11  ;;  %v775_v40 = vmul.f32 %v3404_v48, %v745_v47  ;;  %v974_v32 = vmul.f32 %v3404_v48, %v940_v0  ;;  %v2392_v20 = vpop.f32.mrb[23].mxu0  ;;  %v2366_v29 = vpop.f32.mrb[23].mxu1 }
 0x10d   :  { %v3538_v47 = vpop.permute.xlu1 %1608 }
 0x10e   :  { %v3520_v60 = vmax.f32 %v444_v9, %v637_v63  ;;  %v838_v58 = vmax.f32 %v3451_v49, %v831_v50  ;;  %v782_v17 = vadd.f32 %v3410_v54, %v775_v40  ;;  %v981_v3 = vadd.f32 %v3410_v54, %v974_v32 }
 0x10f   :  { %v750_v5 = vpop.f32.mrb[24].mxu1  ;;  %v945_v24 = vpop.f32.mrb[24].mxu0 }
 0x110   :  { %v832_v22 = vadd.f32 %v3355_v27, %v782_v17  ;;  %v1031_v57 = vadd.f32 %v3357_v28, %v981_v3  ;;  %v776_v25 = vmul.f32 %v3404_v48, %v750_v5  ;;  %v975_v35 = vmul.f32 %v3404_v48, %v945_v24  ;;  %v2395_v7 = vpop.f32.mrb[25].mxu0  ;;  %v2369_v26 = vpop.f32.mrb[25].mxu1 }
 0x112   :  { %v839_v19 = vmax.f32 %v3461_v52, %v832_v22  ;;  %v3530_v15 = vmax.f32 %v838_v58, %v1031_v57  ;;  %v783_v49 = vadd.f32 %v3410_v54, %v776_v25  ;;  %v982_v10 = vadd.f32 %v3410_v54, %v975_v35  ;;  %v3540_v52 = vpop.permute.xlu0 %1418 }
 0x113   :  { %v755_v4 = vpop.f32.mrb[26].mxu1  ;;  %v950_v18 = vpop.f32.mrb[26].mxu0 }
 0x114   :  { %v833_v27 = vadd.f32 %v3367_v34, %v783_v49  ;;  %v1032_v28 = vadd.f32 %v3361_v31, %v982_v10  ;;  %v777_v14 = vmul.f32 %v3404_v48, %v755_v4  ;;  %v976_v9 = vmul.f32 %v3404_v48, %v950_v18  ;;  %v2398_v21 = vpop.f32.mrb[27].mxu0  ;;  %v2372_v11 = vpop.f32.mrb[27].mxu1 }
 0x115   :  { %v829_v49 = vpop.permute.xlu1 %828 }
 0x116   :  { %v840_v0 = vmax.f32 %v3474_v30, %v833_v27  ;;  %v3543_v63 = vmax.f32 %v839_v19, %v1032_v28  ;;  %v784_v50 = vadd.f32 %v3410_v54, %v777_v14  ;;  %v983_v34 = vadd.f32 %v3410_v54, %v976_v9 }
 0x117   :  { %v760_v40 = vpop.f32.mrb[28].mxu1  ;;  %v955_v31 = vpop.f32.mrb[28].mxu0 }
 0x118   :  { %v834_v32 = vadd.f32 %v3373_v37, %v784_v50  ;;  %v1033_v20 = vadd.f32 %v3379_v39, %v983_v34  ;;  %v778_v29 = vmul.f32 %v3404_v48, %v760_v40  ;;  %v977_v58 = vmul.f32 %v3404_v48, %v955_v31  ;;  %v2401_v17 = vpop.f32.mrb[29].mxu0  ;;  %v2375_v3 = vpop.f32.mrb[29].mxu1 }
 0x119   :  { %v3579_v3 = vpop.permute.xlu1 %1423 }
 0x11a   :  { %v841_v30 = vmax.f32 %v3486_v23, %v834_v32  ;;  %v3552_v5 = vmax.f32 %v840_v0, %v1033_v20  ;;  %v785_v24 = vadd.f32 %v3410_v54, %v778_v29  ;;  %v984_v22 = vadd.f32 %v3410_v54, %v977_v58  ;;  %v3560_v23 = vpop.permute.xlu0 %1808 }
 0x11b   :  { %v765_v57 = vpop.f32.mrb[30].mxu1  ;;  %v960_v25 = vpop.f32.mrb[30].mxu0 }
 0x11c   :  { %v835_v37 = vadd.f32 %v3387_v43, %v785_v24  ;;  %v1034_v39 = vadd.f32 %v3385_v42, %v984_v22  ;;  %v779_v35 = vmul.f32 %v3404_v48, %v765_v57  ;;  %v978_v7 = vmul.f32 %v3404_v48, %v960_v25  ;;  %v2404_v26 = vpop.f32.mrb[31].mxu0  ;;  %v2378_v19 = vpop.f32.mrb[31].mxu1 }
 0x11e   :  { %v842_v10 = vmax.f32 %v3500_v33, %v835_v37  ;;  %v3563_v4 = vmax.f32 %v841_v30, %v1034_v39  ;;  %v786_v18 = vadd.f32 %v3410_v54, %v779_v35  ;;  %v985_v27 = vadd.f32 %v3410_v54, %v978_v7 }
 0x11f   :  { %v770_v43 = vpop.f32.mrb[32].mxu1  ;;  %v965_v28 = vpop.f32.mrb[32].mxu0 }
 0x120   :  { %v836_v42 = vadd.f32 %v3393_v13, %v786_v18  ;;  %v1035_v14 = vadd.f32 %v3419_v62, %v985_v27  ;;  %v780_v9 = vmul.f32 %v3404_v48, %v770_v43  ;;  %v979_v21 = vmul.f32 %v3404_v48, %v965_v28  ;;  %v2407_v11 = vpop.f32.mrb[33].mxu0  ;;  %v2381_v0 = vpop.f32.mrb[33].mxu1 }
 0x121   :  { %v3598_v11 = vpop.permute.xlu1 %1813 }
 0x122   :  { %v843_v33 = vmax.f32 %v3509_v55, %v836_v42  ;;  %v3572_v50 = vmax.f32 %v842_v10, %v1035_v14  ;;  %v787_v34 = vadd.f32 %v3410_v54, %v780_v9  ;;  %v986_v40 = vadd.f32 %v3410_v54, %v979_v21  ;;  %v1029_v55 = vpop.permute.xlu0 %1028 }
 0x123   :  { %v970_v31 = vpop.f32.mrb[34].mxu0  ;;  %v1140_v32 = vpop.f32.mrb[34].mxu1 }
 0x124   :  { %v837_v20 = vadd.f32 %v829_v49, %v787_v34  ;;  %v1036_v13 = vadd.f32 %v3447_v1, %v986_v40  ;;  %v980_v62 = vmul.f32 %v3404_v48, %v970_v31  ;;  %v1174_v29 = vmul.f32 %v3404_v48, %v1140_v32  ;;  %v2410_v58 = vpop.f32.mrb[35].mxu0  ;;  %v2421_v17 = vpop.f32.mrb[35].mxu1 }
 0x126   :  { %v844_v30 = vmax.f32 %v3520_v60, %v837_v20  ;;  %v3582_v24 = vmax.f32 %v843_v33, %v1036_v13  ;;  %v987_v22 = vadd.f32 %v3410_v54, %v980_v62  ;;  %v1181_v57 = vadd.f32 %v3410_v54, %v1174_v29  ;;  %v3609_v29 = vpop.permute.xlu0 %1623 }
 0x127   :  { %v1145_v25 = vpop.f32.mrb[36].mxu1  ;;  %v1340_v37 = vpop.f32.mrb[36].mxu0 }
 0x128   :  { %v1037_v1 = vadd.f32 %v1029_v55, %v987_v22  ;;  %v1231_v39 = vadd.f32 %v3371_v36, %v1181_v57  ;;  %v1175_v35 = vmul.f32 %v3404_v48, %v1145_v25  ;;  %v1374_v7 = vmul.f32 %v3404_v48, %v1340_v37  ;;  %v2450_v26 = vpop.f32.mrb[37].mxu0  ;;  %v2424_v19 = vpop.f32.mrb[37].mxu1 }
 0x12a   :  { %v3589_v49 = vmax.f32 %v844_v30, %v1037_v1  ;;  %v1238_v60 = vmax.f32 %v3530_v15, %v1231_v39  ;;  %v1182_v10 = vadd.f32 %v3410_v54, %v1175_v35  ;;  %v1381_v18 = vadd.f32 %v3410_v54, %v1374_v7  ;;  %v3620_v39 = vpop.permute.xlu1 %1618 }
 0x12b   :  { %v1150_v27 = vpop.f32.mrb[38].mxu1  ;;  %v1345_v43 = vpop.f32.mrb[38].mxu0 }
 0x12c   :  { %v1232_v28 = vadd.f32 %v3377_v38, %v1182_v10  ;;  %v1431_v36 = vadd.f32 %v3383_v41, %v1381_v18  ;;  %v1176_v42 = vmul.f32 %v3404_v48, %v1150_v27  ;;  %v1375_v14 = vmul.f32 %v3404_v48, %v1345_v43  ;;  %v2453_v9 = vpop.f32.mrb[39].mxu0  ;;  %v2427_v21 = vpop.f32.mrb[39].mxu1 }
 0x12e   :  { %v1239_v15 = vmax.f32 %v3543_v63, %v1232_v28  ;;  %v3601_v0 = vmax.f32 %v1238_v60, %v1431_v36  ;;  %v1183_v33 = vadd.f32 %v3410_v54, %v1176_v42  ;;  %v1382_v34 = vadd.f32 %v3410_v54, %v1375_v14  ;;  %v3631_v28 = vpop.permute.xlu0 %1818 }
 0x12f   :  { %v1155_v40 = vpop.f32.mrb[40].mxu1  ;;  %v1350_v38 = vpop.f32.mrb[40].mxu0 }
 0x130   :  { %v1233_v41 = vadd.f32 %v3391_v12, %v1183_v33  ;;  %v1432_v31 = vadd.f32 %v3389_v44, %v1382_v34  ;;  %v1177_v32 = vmul.f32 %v3404_v48, %v1155_v40  ;;  %v1376_v20 = vmul.f32 %v3404_v48, %v1350_v38  ;;  %v2456_v13 = vpop.f32.mrb[41].mxu0  ;;  %v2430_v62 = vpop.f32.mrb[41].mxu1 }
 0x131   :  { %v1229_v38 = vpop.permute.xlu1 %1228 }
 0x132   :  { %v1240_v63 = vmax.f32 %v3552_v5, %v1233_v41  ;;  %v3612_v58 = vmax.f32 %v1239_v15, %v1432_v31  ;;  %v1184_v17 = vadd.f32 %v3410_v54, %v1177_v32  ;;  %v1383_v55 = vadd.f32 %v3410_v54, %v1376_v20 }
 0x133   :  { %v1160_v30 = vpop.f32.mrb[42].mxu1  ;;  %v1355_v12 = vpop.f32.mrb[42].mxu0 }
 0x134   :  { %v1234_v44 = vadd.f32 %v3397_v46, %v1184_v17  ;;  %v1433_v22 = vadd.f32 %v3429_v51, %v1383_v55  ;;  %v1178_v57 = vmul.f32 %v3404_v48, %v1160_v30  ;;  %v1377_v25 = vmul.f32 %v3404_v48, %v1355_v12  ;;  %v2459_v37 = vpop.f32.mrb[43].mxu0  ;;  %v2433_v1 = vpop.f32.mrb[43].mxu1 }
 0x135   :  { %v1429_v30 = vpop.permute.xlu0 %1428 }
 0x136   :  { %v1241_v5 = vmax.f32 %v3563_v4, %v1234_v44  ;;  %v3623_v35 = vmax.f32 %v1240_v63, %v1433_v22  ;;  %v1185_v7 = vadd.f32 %v3410_v54, %v1178_v57  ;;  %v1384_v26 = vadd.f32 %v3410_v54, %v1377_v25 }
 0x137   :  { %v1165_v19 = vpop.f32.mrb[44].mxu1  ;;  %v1360_v46 = vpop.f32.mrb[44].mxu0 }
 0x138   :  { %v1235_v51 = vadd.f32 %v3516_v56, %v1185_v7  ;;  %v1434_v60 = vadd.f32 %v3472_v16, %v1384_v26  ;;  %v1179_v10 = vmul.f32 %v3404_v48, %v1165_v19  ;;  %v1378_v18 = vmul.f32 %v3404_v48, %v1360_v46  ;;  %v2462_v27 = vpop.f32.mrb[45].mxu0  ;;  %v2436_v43 = vpop.f32.mrb[45].mxu1 }
 0x13a   :  { %v1242_v4 = vmax.f32 %v3572_v50, %v1235_v51  ;;  %v3634_v36 = vmax.f32 %v1241_v5, %v1434_v60  ;;  %v1186_v42 = vadd.f32 %v3410_v54, %v1179_v10  ;;  %v1385_v14 = vadd.f32 %v3410_v54, %v1378_v18 }
 0x13b   :  { %v1170_v9 = vpop.f32.mrb[46].mxu1  ;;  %v1365_v56 = vpop.f32.mrb[46].mxu0 }
 0x13c   :  { %v1236_v16 = vadd.f32 %v3498_v8, %v1186_v42  ;;  %v1435_v21 = vadd.f32 %v3540_v52, %v1385_v14  ;;  %v1180_v15 = vmul.f32 %v3404_v48, %v1170_v9  ;;  %v1379_v33 = vmul.f32 %v3404_v48, %v1365_v56  ;;  %v2465_v34 = vpop.f32.mrb[47].mxu0  ;;  %v2439_v40 = vpop.f32.mrb[47].mxu1 }
 0x13e   :  { %v1243_v50 = vmax.f32 %v3582_v24, %v1236_v16  ;;  %v3643_v41 = vmax.f32 %v1242_v4, %v1435_v21  ;;  %v1187_v31 = vadd.f32 %v3410_v54, %v1180_v15  ;;  %v1386_v32 = vadd.f32 %v3410_v54, %v1379_v33 }
 0x13f   :  { %v1370_v20 = vpop.f32.mrb[48].mxu0  ;;  %v1540_v13 = vpop.f32.mrb[48].mxu1 }
 0x140   :  { %v1237_v8 = vadd.f32 %v1229_v38, %v1187_v31  ;;  %v1436_v52 = vadd.f32 %v3579_v3, %v1386_v32  ;;  %v1380_v62 = vmul.f32 %v3404_v48, %v1370_v20  ;;  %v1574_v63 = vmul.f32 %v3404_v48, %v1540_v13  ;;  %v2468_v17 = vpop.f32.mrb[49].mxu0  ;;  %v2479_v55 = vpop.f32.mrb[49].mxu1  ;;  %v1853_v32 = vld [vmem:[%s3739_s5 + $0x8] sm:$0xff]  ;;  %v1852_v13 = vld [vmem:[%s3739_s5] sm:$0xff] }
 0x142   :  { %v1244_v24 = vmax.f32 %v3589_v49, %v1237_v8  ;;  %v3651_v12 = vmax.f32 %v1243_v50, %v1436_v52  ;;  %v1387_v44 = vadd.f32 %v3410_v54, %v1380_v62  ;;  %v1581_v22 = vadd.f32 %v3410_v54, %v1574_v63 }
 0x143   :  { %v1545_v57 = vpop.f32.mrb[50].mxu1  ;;  %v1740_v25 = vpop.f32.mrb[50].mxu0 }
 0x144   :  { %v1437_v37 = vadd.f32 %v1429_v30, %v1387_v44  ;;  %v1631_v3 = vadd.f32 %v3395_v45, %v1581_v22  ;;  %v1575_v1 = vmul.f32 %v3404_v48, %v1545_v57  ;;  %v1774_v5 = vmul.f32 %v3404_v48, %v1740_v25  ;;  %v2508_v7 = vpop.f32.mrb[51].mxu0  ;;  %v2482_v26 = vpop.f32.mrb[51].mxu1 }
 0x146   :  { %v3658_v19 = vmax.f32 %v1244_v24, %v1437_v37  ;;  %v1638_v49 = vmax.f32 %v3601_v0, %v1631_v3  ;;  %v1582_v46 = vadd.f32 %v3410_v54, %v1575_v1  ;;  %v1781_v51 = vadd.f32 %v3410_v54, %v1774_v5 }
 0x147   :  { %v1550_v60 = vpop.f32.mrb[52].mxu1  ;;  %v1745_v10 = vpop.f32.mrb[52].mxu0 }
 0x148   :  { %v1632_v18 = vadd.f32 %v3417_v61, %v1582_v46  ;;  %v1831_v45 = vadd.f32 %v3449_v2, %v1781_v51  ;;  %v1576_v27 = vmul.f32 %v3404_v48, %v1550_v60  ;;  %v1775_v43 = vmul.f32 %v3404_v48, %v1745_v10  ;;  %v2511_v4 = vpop.f32.mrb[53].mxu0  ;;  %v2485_v42 = vpop.f32.mrb[53].mxu1  ;;  %v1854_v51 = vld [vmem:[%s3739_s5 + $0x10] sm:$0xff] }
 0x14a   :  { %v1639_v14 = vmax.f32 %v3612_v58, %v1632_v18  ;;  %v1838_v9 = vmax.f32 %v1638_v49, %v1831_v45  ;;  %v1583_v0 = vadd.f32 %v3410_v54, %v1576_v27  ;;  %v1782_v56 = vadd.f32 %v3410_v54, %v1775_v43  ;;  %v1824_v49 = vpop.permute.xlu1 %1823  ;;  %v1855_v18 = vld [vmem:[%s3739_s5 + $0x18] sm:$0xff] }
 0x14b   :  { %v1555_v16 = vpop.f32.mrb[54].mxu1  ;;  %v1750_v21 = vpop.f32.mrb[54].mxu0 }
 0x14c   :  { %v1633_v15 = vadd.f32 %v3538_v47, %v1583_v0  ;;  %v1832_v61 = vadd.f32 %v3496_v53, %v1782_v56  ;;  %v1577_v2 = vmul.f32 %v3404_v48, %v1555_v16  ;;  %v2514_v33 = vpop.f32.mrb[55].mxu0  ;;  %v2488_v34 = vpop.f32.mrb[55].mxu1  ;;  %v1776_v40 = vmul.f32 %v3404_v48, %v1750_v21 }
 0x14d   :  { %v1845_v31 = vmax.f32 %v1838_v9, 0.0 }
 0x14e   :  { %v1640_v38 = vmax.f32 %v3623_v35, %v1633_v15  ;;  %v1839_v58 = vmax.f32 %v1639_v14, %v1832_v61  ;;  %v1584_v50 = vadd.f32 %v3410_v54, %v1577_v2  ;;  %v1783_v47 = vadd.f32 %v3410_v54, %v1776_v40  ;;  %v1629_v2 = vpop.permute.xlu1 %1628 }
 0x14f   :  { %v1560_v20 = vpop.f32.mrb[56].mxu1  ;;  %v1755_v53 = vpop.f32.mrb[56].mxu0  ;;  %v1859_v57 = vmul.f32 %v1852_v13, %v1845_v31 }
 0x150   :  { %v1846_v8 = vmax.f32 %v1839_v58, 0.0  ;;  %v1634_v52 = vadd.f32 %v3518_v59, %v1584_v50  ;;  %v1578_v35 = vmul.f32 %v3404_v48, %v1560_v20  ;;  %v1777_v62 = vmul.f32 %v3404_v48, %v1755_v53  ;;  %v2517_v63 = vpop.f32.mrb[57].mxu0  ;;  %v2491_v17 = vpop.f32.mrb[57].mxu1  ;;  %v1856_v20 = vld [vmem:[%s3739_s5 + $0x20] sm:$0xff] }
 0x151   :  { %v1833_v55 = vadd.f32 %v3560_v23, %v1783_v47  ;;  %v1866_v17 = vld [vmem:[%s3740_s6] sm:$0x3] }
 0x152   :  { %v1860_v30 = vmul.f32 %v1853_v32, %v1846_v8  ;;  %v1641_v24 = vmax.f32 %v3634_v36, %v1634_v52  ;;  %v1585_v44 = vadd.f32 %v3410_v54, %v1578_v35  ;;  %v1784_v22 = vadd.f32 %v3410_v54, %v1777_v62  ;;  %v1829_v32 = vpop.permute.xlu0 %1828  ;;  %v1858_v62 = vld [vmem:[%s3739_s5 + $0x30] sm:$0x3] }
 0x153   :  { %v1840_v25 = vmax.f32 %v1640_v38, %v1833_v55  ;;  %v1565_v37 = vpop.f32.mrb[58].mxu1  ;;  %v1760_v3 = vpop.f32.mrb[58].mxu0  ;;  %v13_v55 = vstv %s3741_s7 }
 0x154   :  { %v1635_v59 = vadd.f32 %v3620_v39, %v1585_v44  ;;  %v1834_v1 = vadd.f32 %v3598_v11, %v1784_v22  ;;  %v1579_v5 = vmul.f32 %v3404_v48, %v1565_v37  ;;  %v1778_v7 = vmul.f32 %v3404_v48, %v1760_v3  ;;  %v2520_v23 = vpop.f32.mrb[59].mxu0  ;;  %v2494_v26 = vpop.f32.mrb[59].mxu1  ;;  %14 = vst [vmem:[#allocation2] sm:$0x1] %v13_v55 }
 0x155   :  { %v1847_v36 = vmax.f32 %v1840_v25, 0.0  ;;  %v2608_v46 = vpack.c.bf16 %v1860_v30, %v1859_v57 }
 0x156   :  { %v1642_v60 = vmax.f32 %v3643_v41, %v1635_v59  ;;  %v1841_v10 = vmax.f32 %v1641_v24, %v1834_v1  ;;  %v1586_v39 = vadd.f32 %v3410_v54, %v1579_v5  ;;  %v1785_v11 = vadd.f32 %v3410_v54, %v1778_v7 }
 0x157   :  { %2609 = vmatpush3.bf16.msra.mxu1 %v2608_v46  ;;  %v1570_v45 = vpop.f32.mrb[60].mxu1  ;;  %v1765_v27 = vpop.f32.mrb[60].mxu0  ;;  %v1861_v0 = vmul.f32 %v1854_v51, %v1847_v36 }
 0x158   :  { %v1848_v43 = vmax.f32 %v1841_v10, 0.0  ;;  %v1636_v4 = vadd.f32 %v3609_v29, %v1586_v39  ;;  %v1835_v42 = vadd.f32 %v3631_v28, %v1785_v11  ;;  %v1580_v14 = vmul.f32 %v3404_v48, %v1570_v45  ;;  %v2523_v41 = vpop.f32.mrb[61].mxu0  ;;  %2610 = vmatprep.subr.bf16.mxu1 %v2632_v6  ;;  %v2497_v9 = vpop.f32.mrb[61].mxu1 }
 0x159   :  { %v1779_v56 = vmul.f32 %v3404_v48, %v1765_v27 }
 0x15a   :  { %v1862_v16 = vmul.f32 %v1855_v18, %v1848_v43  ;;  %v1643_v21 = vmax.f32 %v3651_v12, %v1636_v4  ;;  %v1842_v15 = vmax.f32 %v1642_v60, %v1835_v42  ;;  %v1587_v61 = vadd.f32 %v3410_v54, %v1580_v14 }
 0x15b   :  { %v1786_v29 = vadd.f32 %v3410_v54, %v1779_v56  ;;  %v1770_v33 = vpop.f32.mrb[62].mxu0  ;;  %v2157_v22 = vld [vmem:[#allocation2] ss:$0 sm:$0xff] }
 0x15c   :  { %v1637_v28 = vadd.f32 %v1629_v2, %v1587_v61  ;;  %v1780_v34 = vmul.f32 %v3404_v48, %v1770_v33  ;;  %v2611_v40 = vpack.c.bf16 %v1862_v16, %v1861_v0  ;;  %v2526_v38 = vpop.f32.mrb[63].mxu0  ;;  %v1849_v12 = vmax.f32 %v1842_v15, 0.0  ;;  %v1857_v48 = vld [vmem:[%s3739_s5 + $0x28] sm:$0xff] }
 0x15d   :  { %v1836_v58 = vadd.f32 %v1824_v49, %v1786_v29 }
 0x15e   :  { %v1644_v50 = vmax.f32 %v3658_v19, %v1637_v28  ;;  %v1787_v31 = vadd.f32 %v3410_v54, %v1780_v34  ;;  %2612 = vmatpush3.bf16.msra.mxu1 %v2611_v40  ;;  %v1863_v19 = vmul.f32 %v1856_v20, %v1849_v12 }
 0x15f   :  { %v1843_v47 = vmax.f32 %v1643_v21, %v1836_v58  ;;  %2613 = vmatprep.subr.bf16.mxu1 %v2632_v6  ;;  %v3746_v6 = vmov 0.0  }
 0x160   :  { %v1837_v53 = vadd.f32 %v1829_v32, %v1787_v31 }
 0x161   :  { %v1850_v13 = vmax.f32 %v1843_v47, 0.0 }
 0x162   :  { %v1844_v8 = vmax.f32 %v1644_v50, %v1837_v53 }
 0x163   :  { %v1864_v52 = vmul.f32 %v1857_v48, %v1850_v13 }
 0x164   :  { %v1851_v54 = vmax.f32 %v1844_v8, 0.0 }
 0x165   :  { %v2614_v35 = vpack.c.bf16 %v1864_v52, %v1863_v19 }
 0x166   :  { %v1865_v63 = vmul.f32 %v1858_v62, %v1851_v54 }
 0x167   :  { %2615 = vmatpush3.bf16.msra.mxu1 %v2614_v35 }
 0x168   :  { %2539 = vmatprep.subr.mxu1 %v3746_v6 }
 0x16b   :  { %2540 = vmatpush3.msk.msra.mxu1 %vm1871_vm5, %v1865_v63 }
 0x16c   :  { %2542 = vmatmul.mubr.msk.f32.vlgmr.msra.gmra.mrb[62].mxu1 %vm1867_vm6, %v1866_v17 }
 0x23f   :  { %v1941_v30 = vpop.f32.mrb[62].mxu1 }
 0x240   :  { %v2543_v24 = vpop.f32.mrb[63].mxu1  ;;  %v1946_v44 = vsel %vm1945_vm7, %v1941_v30, 0.0 }
 0x241   :  { %1947 = vadd.xlane.f32.xlu1 %v1946_v44 }
 0x2ce   :  { %v1948_v57 = vpop.xlane.xlu1 %1947 }
 0x2cf   :  { %v1956_v25 = vadd.f32 %v2157_v22, %v1948_v57 }
 0x2d1   :  { %v2158_v37 = vmul.f32 -1.442695, %v1956_v25 }
 0x2d3   :  { %2627 = vpow2.f32 %v2158_v37 }
 0x2dd   :  { %v2628_v3 = vpop.eup %2627 }
 0x2de   :  { %v1960_v59 = vadd.f32 1.0, %v2628_v3 }
 0x2e0   :  { %2629 = vrcp.f32 %v1960_v59 }
 0x2ea   :  { %v2630_v1 = vpop.eup %2629 }
 0x2eb   :  { %1964 = vst.msk [vmem:[%s3742_s8] sm:$0x3] %vm1963_vm8, %v2630_v1 }

</bundles_post_ra>
